<compile_context>
chip_gen: v5e
topology: v5e:2x2
jax: 0.10.0
libtpu: 0.0.40
codegen_flags: <defaults>
</compile_context>

<pallas_src>
import functools

import jax
import jax.numpy as jnp
from jax import lax
from jax.experimental import pallas as pl
from jax.experimental.pallas import tpu as pltpu

_PAD_B = 8  # pad the batch to one full sublane tile


def _lstm_kernel(x_ref, wih_ref, whh_ref, b_ref, o_ref, *, seq_len, hidden):
    """Single-layer LSTM forward, whole (padded) batch in one invocation.

    x_ref:   (S*P, F)   time-major input, batch padded to P=8 sublanes
    wih_ref: (F, 4H)    input->gates weight (i/f/o columns pre-scaled by 0.5)
    whh_ref: (H, 4H)    hidden->gates weight (i/f/o columns pre-scaled by 0.5)
    b_ref:   (1, 4H)    bias_ih + bias_hh   (i/f/o columns pre-scaled by 0.5)
    o_ref:   (P, S*H)   batch-first output; lanes [t*H:(t+1)*H] hold h_t
    Gate order along the 4H axis is PyTorch's [i, f, g, o].
    """
    S, H = seq_len, hidden
    P = _PAD_B

    # (1) One fused input projection for every timestep (+ pre-scaled bias),
    #     kept as a register-resident value — no scratch round-trip.
    xg = (jnp.dot(x_ref[...], wih_ref[...], preferred_element_type=jnp.float32)
          + b_ref[...])                                          # (S*P, 4H)

    # Recurrent weight stays resident in vregs across the whole recurrence.
    whh = whh_ref[...]                                           # (H, 4H)

    h = jnp.zeros((P, H), jnp.float32)
    c = jnp.zeros((P, H), jnp.float32)

    # Pack this many steps' h into one full 128-lane tile before each store.
    steps_per_store = 128 // H if (H <= 128 and 128 % H == 0) else 1
    pending = []

    # (2) Fully-unrolled recurrence (seq_len is static & small).  Per step:
    #     one lane-dense (P,H)@(H,4H) matmul, ONE full-width tanh over the
    #     gates tile, a few cheap VPU affines, and tanh(c).
    for t in range(S):
        gates = xg[t * P:(t + 1) * P, :] + jnp.dot(
            h, whh, preferred_element_type=jnp.float32)          # (P, 4H)
        act = jnp.tanh(gates)                                    # single EUP push
        # i/f/o pre-activations were pre-scaled by 0.5, so
        # sigmoid(x) = 0.5 * tanh(0.5*x) + 0.5 = 0.5 * act + 0.5.
        i_g = 0.5 * act[:, 0 * H:1 * H] + 0.5
        f_g = 0.5 * act[:, 1 * H:2 * H] + 0.5
        g_g = act[:, 2 * H:3 * H]                                # plain tanh gate
        o_g = 0.5 * act[:, 3 * H:4 * H] + 0.5
        c = f_g * c + i_g * g_g
        h = o_g * jnp.tanh(c)                                    # second EUP push

        pending.append(h)
        if len(pending) == steps_per_store or t == S - 1:
            start = (t + 1 - len(pending)) * H
            blk = pending[0] if len(pending) == 1 else jnp.concatenate(
                pending, axis=-1)
            o_ref[:, start:start + len(pending) * H] = blk.astype(o_ref.dtype)
            pending = []


def lstm_forward(x, weight_ih, weight_hh, bias_ih, bias_hh):
    """x: (B, S, F) batch-first.  Weights in PyTorch nn.LSTM layout:
    weight_ih (4H, F), weight_hh (4H, H), biases (4H,).  Returns y: (B, S, H)."""
    B, S, F = x.shape
    H = weight_hh.shape[1]
    P = _PAD_B
    if B > P:
        raise NotImplementedError("demo wrapper assumes batch <= 8")

    # Fold the sigmoid 0.5 pre-scale for the [i, f, o] gate columns into the
    # weights/bias (one-time layout/scale plumbing, done outside the kernel).
    col_scale = jnp.concatenate([
        jnp.full((H,), 0.5, jnp.float32), jnp.full((H,), 0.5, jnp.float32),
        jnp.ones((H,), jnp.float32), jnp.full((H,), 0.5, jnp.float32)])
    wih_t = weight_ih.T.astype(jnp.float32) * col_scale            # (F, 4H)
    whh_t = weight_hh.T.astype(jnp.float32) * col_scale            # (H, 4H)
    bias = ((bias_ih + bias_hh).astype(jnp.float32) * col_scale).reshape(1, 4 * H)

    # Pad the batch to one full sublane tile and go time-major (tiny arrays;
    # the heavier output-side transpose is eliminated entirely).
    x_pad = jnp.zeros((P, S, F), jnp.float32).at[:B].set(x.astype(jnp.float32))
    x_tm = jnp.transpose(x_pad, (1, 0, 2)).reshape(S * P, F)       # (S*P, F)

    kernel = functools.partial(_lstm_kernel, seq_len=S, hidden=H)

    y_flat = pl.pallas_call(
        kernel,
        out_shape=jax.ShapeDtypeStruct((P, S * H), jnp.float32),
        in_specs=[
            pl.BlockSpec(memory_space=pltpu.MemorySpace.VMEM),     # x (time-major, padded)
            pl.BlockSpec(memory_space=pltpu.MemorySpace.VMEM),     # W_ih^T (pre-scaled)
            pl.BlockSpec(memory_space=pltpu.MemorySpace.VMEM),     # W_hh^T (pre-scaled)
            pl.BlockSpec(memory_space=pltpu.MemorySpace.VMEM),     # bias   (pre-scaled)
        ],
        out_specs=pl.BlockSpec(memory_space=pltpu.MemorySpace.VMEM),
    )(x_tm, wih_t, whh_t, bias)

    # Output is already batch-first: just split the lane dim and drop padding.
    return y_flat.reshape(P, S, H)[:B]


def _lstm_reference(x, weight_ih, weight_hh, bias_ih, bias_hh):
    """Pure-JAX reference (same math as torch.nn.LSTM, batch_first, h0=c0=0)."""
    B, S, F = x.shape
    H = weight_hh.shape[1]
    wih_t = weight_ih.T
    whh_t = weight_hh.T
    b = bias_ih + bias_hh

    def step(carry, x_t):
        h, c = carry
        gates = x_t @ wih_t + h @ whh_t + b
        i_g = jax.nn.sigmoid(gates[:, 0 * H:1 * H])
        f_g = jax.nn.sigmoid(gates[:, 1 * H:2 * H])
        g_g = jnp.tanh(gates[:, 2 * H:3 * H])
        o_g = jax.nn.sigmoid(gates[:, 3 * H:4 * H])
        c = f_g * c + i_g * g_g
        h = o_g * jnp.tanh(c)
        return (h, c), h

    h0 = jnp.zeros((B, H), jnp.float32)
    c0 = jnp.zeros((B, H), jnp.float32)
    _, ys = lax.scan(step, (h0, c0), jnp.transpose(x, (1, 0, 2)))
    return jnp.transpose(ys, (1, 0, 2))


if __name__ == "__main__":
    # Shapes implied by the module: num_features F = 4, hidden_size H = 32,
    # batch B = 2, sequence length S = 16.
    B, S, F, H = 2, 16, 4, 32

    key = jax.random.PRNGKey(0)
    k_x, k_wih, k_whh, k_bih, k_bhh = jax.random.split(key, 5)

    x = jax.random.normal(k_x, (B, S, F), dtype=jnp.float32)

    bound = 1.0 / (H ** 0.5)  # PyTorch nn.LSTM init range
    weight_ih = jax.random.uniform(k_wih, (4 * H, F), jnp.float32, -bound, bound)
    weight_hh = jax.random.uniform(k_whh, (4 * H, H), jnp.float32, -bound, bound)
    bias_ih = jax.random.uniform(k_bih, (4 * H,), jnp.float32, -bound, bound)
    bias_hh = jax.random.uniform(k_bhh, (4 * H,), jnp.float32, -bound, bound)

    y = lstm_forward(x, weight_ih, weight_hh, bias_ih, bias_hh)
    jax.block_until_ready(y)
    assert y.shape == (B, S, H), y.shape

    y_ref = _lstm_reference(x, weight_ih, weight_hh, bias_ih, bias_hh)
    assert jnp.allclose(y, y_ref, atol=1e-2, rtol=1e-2), float(
        jnp.max(jnp.abs(y - y_ref)))

    print("KERNEL_OK")
</pallas_src>

<mosaic_0001>
module attributes {stable_mosaic.version = 11 : i64} {
  func.func @_lstm_kernel(%arg0: memref<128x4xf32, #tpu.memory_space<vmem>>, %arg1: memref<4x128xf32, #tpu.memory_space<vmem>>, %arg2: memref<32x128xf32, #tpu.memory_space<vmem>>, %arg3: memref<1x128xf32, #tpu.memory_space<vmem>>, %arg4: memref<8x512xf32, #tpu.memory_space<vmem>>) attributes {dimension_semantics = [], scalar_prefetch = 0 : i64, scratch_operands = 0 : i64, tpu.core_type = #tpu.core_type<tc>} {
    %c0 = arith.constant 0 : index
    %c0_0 = arith.constant 0 : index
    %0 = vector.load %arg0[%c0, %c0_0] : memref<128x4xf32, #tpu.memory_space<vmem>>, vector<128x4xf32>
    %c0_1 = arith.constant 0 : index
    %c0_2 = arith.constant 0 : index
    %1 = vector.load %arg1[%c0_1, %c0_2] : memref<4x128xf32, #tpu.memory_space<vmem>>, vector<4x128xf32>
    %cst = arith.constant dense<0.000000e+00> : vector<128x128xf32>
    %2 = tpu.matmul %0, %1, %cst {dimension_numbers = #tpu.dot_dimension_numbers<[1], [0], [0], [1], [0, 0, 1, 1], [], []>} : vector<128x4xf32>, vector<4x128xf32>, vector<128x128xf32> -> vector<128x128xf32>
    %c0_3 = arith.constant 0 : index
    %c0_4 = arith.constant 0 : index
    %3 = vector.load %arg3[%c0_3, %c0_4] : memref<1x128xf32, #tpu.memory_space<vmem>>, vector<1x128xf32>
    %4 = vector.broadcast %3 : vector<1x128xf32> to vector<128x128xf32>
    %5 = arith.addf %2, %4 : vector<128x128xf32>
    %c0_5 = arith.constant 0 : index
    %c0_6 = arith.constant 0 : index
    %6 = vector.load %arg2[%c0_5, %c0_6] : memref<32x128xf32, #tpu.memory_space<vmem>>, vector<32x128xf32>
    %cst_7 = arith.constant 0.000000e+00 : f32
    %7 = vector.broadcast %cst_7 : f32 to vector<8x32xf32>
    %cst_8 = arith.constant 0.000000e+00 : f32
    %8 = vector.broadcast %cst_8 : f32 to vector<8x32xf32>
    %9 = vector.extract_strided_slice %5 {offsets = [0, 0], sizes = [8, 128], strides = [1, 1]} : vector<128x128xf32> to vector<8x128xf32>
    %cst_9 = arith.constant dense<0.000000e+00> : vector<8x128xf32>
    %10 = tpu.matmul %7, %6, %cst_9 {dimension_numbers = #tpu.dot_dimension_numbers<[1], [0], [0], [1], [0, 0, 1, 1], [], []>} : vector<8x32xf32>, vector<32x128xf32>, vector<8x128xf32> -> vector<8x128xf32>
    %11 = arith.addf %9, %10 : vector<8x128xf32>
    %12 = math.tanh %11 : vector<8x128xf32>
    %13 = vector.extract_strided_slice %12 {offsets = [0, 0], sizes = [8, 32], strides = [1, 1]} : vector<8x128xf32> to vector<8x32xf32>
    %cst_10 = arith.constant 5.000000e-01 : f32
    %14 = vector.broadcast %cst_10 : f32 to vector<8x32xf32>
    %15 = arith.mulf %14, %13 : vector<8x32xf32>
    %cst_11 = arith.constant 5.000000e-01 : f32
    %16 = vector.broadcast %cst_11 : f32 to vector<8x32xf32>
    %17 = arith.addf %15, %16 : vector<8x32xf32>
    %18 = vector.extract_strided_slice %12 {offsets = [0, 32], sizes = [8, 32], strides = [1, 1]} : vector<8x128xf32> to vector<8x32xf32>
    %cst_12 = arith.constant 5.000000e-01 : f32
    %19 = vector.broadcast %cst_12 : f32 to vector<8x32xf32>
    %20 = arith.mulf %19, %18 : vector<8x32xf32>
    %cst_13 = arith.constant 5.000000e-01 : f32
    %21 = vector.broadcast %cst_13 : f32 to vector<8x32xf32>
    %22 = arith.addf %20, %21 : vector<8x32xf32>
    %23 = vector.extract_strided_slice %12 {offsets = [0, 64], sizes = [8, 32], strides = [1, 1]} : vector<8x128xf32> to vector<8x32xf32>
    %24 = vector.extract_strided_slice %12 {offsets = [0, 96], sizes = [8, 32], strides = [1, 1]} : vector<8x128xf32> to vector<8x32xf32>
    %cst_14 = arith.constant 5.000000e-01 : f32
    %25 = vector.broadcast %cst_14 : f32 to vector<8x32xf32>
    %26 = arith.mulf %25, %24 : vector<8x32xf32>
    %cst_15 = arith.constant 5.000000e-01 : f32
    %27 = vector.broadcast %cst_15 : f32 to vector<8x32xf32>
    %28 = arith.addf %26, %27 : vector<8x32xf32>
    %29 = arith.mulf %22, %8 : vector<8x32xf32>
    %30 = arith.mulf %17, %23 : vector<8x32xf32>
    %31 = arith.addf %29, %30 : vector<8x32xf32>
    %32 = math.tanh %31 : vector<8x32xf32>
    %33 = arith.mulf %28, %32 : vector<8x32xf32>
    %34 = vector.extract_strided_slice %5 {offsets = [8, 0], sizes = [8, 128], strides = [1, 1]} : vector<128x128xf32> to vector<8x128xf32>
    %cst_16 = arith.constant dense<0.000000e+00> : vector<8x128xf32>
    %35 = tpu.matmul %33, %6, %cst_16 {dimension_numbers = #tpu.dot_dimension_numbers<[1], [0], [0], [1], [0, 0, 1, 1], [], []>} : vector<8x32xf32>, vector<32x128xf32>, vector<8x128xf32> -> vector<8x128xf32>
    %36 = arith.addf %34, %35 : vector<8x128xf32>
    %37 = math.tanh %36 : vector<8x128xf32>
    %38 = vector.extract_strided_slice %37 {offsets = [0, 0], sizes = [8, 32], strides = [1, 1]} : vector<8x128xf32> to vector<8x32xf32>
    %cst_17 = arith.constant 5.000000e-01 : f32
    %39 = vector.broadcast %cst_17 : f32 to vector<8x32xf32>
    %40 = arith.mulf %39, %38 : vector<8x32xf32>
    %cst_18 = arith.constant 5.000000e-01 : f32
    %41 = vector.broadcast %cst_18 : f32 to vector<8x32xf32>
    %42 = arith.addf %40, %41 : vector<8x32xf32>
    %43 = vector.extract_strided_slice %37 {offsets = [0, 32], sizes = [8, 32], strides = [1, 1]} : vector<8x128xf32> to vector<8x32xf32>
    %cst_19 = arith.constant 5.000000e-01 : f32
    %44 = vector.broadcast %cst_19 : f32 to vector<8x32xf32>
    %45 = arith.mulf %44, %43 : vector<8x32xf32>
    %cst_20 = arith.constant 5.000000e-01 : f32
    %46 = vector.broadcast %cst_20 : f32 to vector<8x32xf32>
    %47 = arith.addf %45, %46 : vector<8x32xf32>
    %48 = vector.extract_strided_slice %37 {offsets = [0, 64], sizes = [8, 32], strides = [1, 1]} : vector<8x128xf32> to vector<8x32xf32>
    %49 = vector.extract_strided_slice %37 {offsets = [0, 96], sizes = [8, 32], strides = [1, 1]} : vector<8x128xf32> to vector<8x32xf32>
    %cst_21 = arith.constant 5.000000e-01 : f32
    %50 = vector.broadcast %cst_21 : f32 to vector<8x32xf32>
    %51 = arith.mulf %50, %49 : vector<8x32xf32>
    %cst_22 = arith.constant 5.000000e-01 : f32
    %52 = vector.broadcast %cst_22 : f32 to vector<8x32xf32>
    %53 = arith.addf %51, %52 : vector<8x32xf32>
    %54 = arith.mulf %47, %31 : vector<8x32xf32>
    %55 = arith.mulf %42, %48 : vector<8x32xf32>
    %56 = arith.addf %54, %55 : vector<8x32xf32>
    %57 = math.tanh %56 : vector<8x32xf32>
    %58 = arith.mulf %53, %57 : vector<8x32xf32>
    %59 = vector.extract_strided_slice %5 {offsets = [16, 0], sizes = [8, 128], strides = [1, 1]} : vector<128x128xf32> to vector<8x128xf32>
    %cst_23 = arith.constant dense<0.000000e+00> : vector<8x128xf32>
    %60 = tpu.matmul %58, %6, %cst_23 {dimension_numbers = #tpu.dot_dimension_numbers<[1], [0], [0], [1], [0, 0, 1, 1], [], []>} : vector<8x32xf32>, vector<32x128xf32>, vector<8x128xf32> -> vector<8x128xf32>
    %61 = arith.addf %59, %60 : vector<8x128xf32>
    %62 = math.tanh %61 : vector<8x128xf32>
    %63 = vector.extract_strided_slice %62 {offsets = [0, 0], sizes = [8, 32], strides = [1, 1]} : vector<8x128xf32> to vector<8x32xf32>
    %cst_24 = arith.constant 5.000000e-01 : f32
    %64 = vector.broadcast %cst_24 : f32 to vector<8x32xf32>
    %65 = arith.mulf %64, %63 : vector<8x32xf32>
    %cst_25 = arith.constant 5.000000e-01 : f32
    %66 = vector.broadcast %cst_25 : f32 to vector<8x32xf32>
    %67 = arith.addf %65, %66 : vector<8x32xf32>
    %68 = vector.extract_strided_slice %62 {offsets = [0, 32], sizes = [8, 32], strides = [1, 1]} : vector<8x128xf32> to vector<8x32xf32>
    %cst_26 = arith.constant 5.000000e-01 : f32
    %69 = vector.broadcast %cst_26 : f32 to vector<8x32xf32>
    %70 = arith.mulf %69, %68 : vector<8x32xf32>
    %cst_27 = arith.constant 5.000000e-01 : f32
    %71 = vector.broadcast %cst_27 : f32 to vector<8x32xf32>
    %72 = arith.addf %70, %71 : vector<8x32xf32>
    %73 = vector.extract_strided_slice %62 {offsets = [0, 64], sizes = [8, 32], strides = [1, 1]} : vector<8x128xf32> to vector<8x32xf32>
    %74 = vector.extract_strided_slice %62 {offsets = [0, 96], sizes = [8, 32], strides = [1, 1]} : vector<8x128xf32> to vector<8x32xf32>
    %cst_28 = arith.constant 5.000000e-01 : f32
    %75 = vector.broadcast %cst_28 : f32 to vector<8x32xf32>
    %76 = arith.mulf %75, %74 : vector<8x32xf32>
    %cst_29 = arith.constant 5.000000e-01 : f32
    %77 = vector.broadcast %cst_29 : f32 to vector<8x32xf32>
    %78 = arith.addf %76, %77 : vector<8x32xf32>
    %79 = arith.mulf %72, %56 : vector<8x32xf32>
    %80 = arith.mulf %67, %73 : vector<8x32xf32>
    %81 = arith.addf %79, %80 : vector<8x32xf32>
    %82 = math.tanh %81 : vector<8x32xf32>
    %83 = arith.mulf %78, %82 : vector<8x32xf32>
    %84 = vector.extract_strided_slice %5 {offsets = [24, 0], sizes = [8, 128], strides = [1, 1]} : vector<128x128xf32> to vector<8x128xf32>
    %cst_30 = arith.constant dense<0.000000e+00> : vector<8x128xf32>
    %85 = tpu.matmul %83, %6, %cst_30 {dimension_numbers = #tpu.dot_dimension_numbers<[1], [0], [0], [1], [0, 0, 1, 1], [], []>} : vector<8x32xf32>, vector<32x128xf32>, vector<8x128xf32> -> vector<8x128xf32>
    %86 = arith.addf %84, %85 : vector<8x128xf32>
    %87 = math.tanh %86 : vector<8x128xf32>
    %88 = vector.extract_strided_slice %87 {offsets = [0, 0], sizes = [8, 32], strides = [1, 1]} : vector<8x128xf32> to vector<8x32xf32>
    %cst_31 = arith.constant 5.000000e-01 : f32
    %89 = vector.broadcast %cst_31 : f32 to vector<8x32xf32>
    %90 = arith.mulf %89, %88 : vector<8x32xf32>
    %cst_32 = arith.constant 5.000000e-01 : f32
    %91 = vector.broadcast %cst_32 : f32 to vector<8x32xf32>
    %92 = arith.addf %90, %91 : vector<8x32xf32>
    %93 = vector.extract_strided_slice %87 {offsets = [0, 32], sizes = [8, 32], strides = [1, 1]} : vector<8x128xf32> to vector<8x32xf32>
    %cst_33 = arith.constant 5.000000e-01 : f32
    %94 = vector.broadcast %cst_33 : f32 to vector<8x32xf32>
    %95 = arith.mulf %94, %93 : vector<8x32xf32>
    %cst_34 = arith.constant 5.000000e-01 : f32
    %96 = vector.broadcast %cst_34 : f32 to vector<8x32xf32>
    %97 = arith.addf %95, %96 : vector<8x32xf32>
    %98 = vector.extract_strided_slice %87 {offsets = [0, 64], sizes = [8, 32], strides = [1, 1]} : vector<8x128xf32> to vector<8x32xf32>
    %99 = vector.extract_strided_slice %87 {offsets = [0, 96], sizes = [8, 32], strides = [1, 1]} : vector<8x128xf32> to vector<8x32xf32>
    %cst_35 = arith.constant 5.000000e-01 : f32
    %100 = vector.broadcast %cst_35 : f32 to vector<8x32xf32>
    %101 = arith.mulf %100, %99 : vector<8x32xf32>
    %cst_36 = arith.constant 5.000000e-01 : f32
    %102 = vector.broadcast %cst_36 : f32 to vector<8x32xf32>
    %103 = arith.addf %101, %102 : vector<8x32xf32>
    %104 = arith.mulf %97, %81 : vector<8x32xf32>
    %105 = arith.mulf %92, %98 : vector<8x32xf32>
    %106 = arith.addf %104, %105 : vector<8x32xf32>
    %107 = math.tanh %106 : vector<8x32xf32>
    %108 = arith.mulf %103, %107 : vector<8x32xf32>
    %109 = tpu.concatenate %33, %58, %83, %108 in 1 : vector<8x32xf32>, vector<8x32xf32>, vector<8x32xf32>, vector<8x32xf32> -> vector<8x128xf32>
    %c0_37 = arith.constant 0 : index
    %c0_38 = arith.constant 0 : index
    %110 = vector.load %arg4[%c0_37, %c0_38] : memref<8x512xf32, #tpu.memory_space<vmem>>, vector<8x128xf32>
    tpu.vector_store %arg4[%c0_37, %c0_38], %109 {strides = array<i32>} : memref<8x512xf32, #tpu.memory_space<vmem>>, vector<8x128xf32>,
    %111 = vector.extract_strided_slice %5 {offsets = [32, 0], sizes = [8, 128], strides = [1, 1]} : vector<128x128xf32> to vector<8x128xf32>
    %cst_39 = arith.constant dense<0.000000e+00> : vector<8x128xf32>
    %112 = tpu.matmul %108, %6, %cst_39 {dimension_numbers = #tpu.dot_dimension_numbers<[1], [0], [0], [1], [0, 0, 1, 1], [], []>} : vector<8x32xf32>, vector<32x128xf32>, vector<8x128xf32> -> vector<8x128xf32>
    %113 = arith.addf %111, %112 : vector<8x128xf32>
    %114 = math.tanh %113 : vector<8x128xf32>
    %115 = vector.extract_strided_slice %114 {offsets = [0, 0], sizes = [8, 32], strides = [1, 1]} : vector<8x128xf32> to vector<8x32xf32>
    %cst_40 = arith.constant 5.000000e-01 : f32
    %116 = vector.broadcast %cst_40 : f32 to vector<8x32xf32>
    %117 = arith.mulf %116, %115 : vector<8x32xf32>
    %cst_41 = arith.constant 5.000000e-01 : f32
    %118 = vector.broadcast %cst_41 : f32 to vector<8x32xf32>
    %119 = arith.addf %117, %118 : vector<8x32xf32>
    %120 = vector.extract_strided_slice %114 {offsets = [0, 32], sizes = [8, 32], strides = [1, 1]} : vector<8x128xf32> to vector<8x32xf32>
    %cst_42 = arith.constant 5.000000e-01 : f32
    %121 = vector.broadcast %cst_42 : f32 to vector<8x32xf32>
    %122 = arith.mulf %121, %120 : vector<8x32xf32>
    %cst_43 = arith.constant 5.000000e-01 : f32
    %123 = vector.broadcast %cst_43 : f32 to vector<8x32xf32>
    %124 = arith.addf %122, %123 : vector<8x32xf32>
    %125 = vector.extract_strided_slice %114 {offsets = [0, 64], sizes = [8, 32], strides = [1, 1]} : vector<8x128xf32> to vector<8x32xf32>
    %126 = vector.extract_strided_slice %114 {offsets = [0, 96], sizes = [8, 32], strides = [1, 1]} : vector<8x128xf32> to vector<8x32xf32>
    %cst_44 = arith.constant 5.000000e-01 : f32
    %127 = vector.broadcast %cst_44 : f32 to vector<8x32xf32>
    %128 = arith.mulf %127, %126 : vector<8x32xf32>
    %cst_45 = arith.constant 5.000000e-01 : f32
    %129 = vector.broadcast %cst_45 : f32 to vector<8x32xf32>
    %130 = arith.addf %128, %129 : vector<8x32xf32>
    %131 = arith.mulf %124, %106 : vector<8x32xf32>
    %132 = arith.mulf %119, %125 : vector<8x32xf32>
    %133 = arith.addf %131, %132 : vector<8x32xf32>
    %134 = math.tanh %133 : vector<8x32xf32>
    %135 = arith.mulf %130, %134 : vector<8x32xf32>
    %136 = vector.extract_strided_slice %5 {offsets = [40, 0], sizes = [8, 128], strides = [1, 1]} : vector<128x128xf32> to vector<8x128xf32>
    %cst_46 = arith.constant dense<0.000000e+00> : vector<8x128xf32>
    %137 = tpu.matmul %135, %6, %cst_46 {dimension_numbers = #tpu.dot_dimension_numbers<[1], [0], [0], [1], [0, 0, 1, 1], [], []>} : vector<8x32xf32>, vector<32x128xf32>, vector<8x128xf32> -> vector<8x128xf32>
    %138 = arith.addf %136, %137 : vector<8x128xf32>
    %139 = math.tanh %138 : vector<8x128xf32>
    %140 = vector.extract_strided_slice %139 {offsets = [0, 0], sizes = [8, 32], strides = [1, 1]} : vector<8x128xf32> to vector<8x32xf32>
    %cst_47 = arith.constant 5.000000e-01 : f32
    %141 = vector.broadcast %cst_47 : f32 to vector<8x32xf32>
    %142 = arith.mulf %141, %140 : vector<8x32xf32>
    %cst_48 = arith.constant 5.000000e-01 : f32
    %143 = vector.broadcast %cst_48 : f32 to vector<8x32xf32>
    %144 = arith.addf %142, %143 : vector<8x32xf32>
    %145 = vector.extract_strided_slice %139 {offsets = [0, 32], sizes = [8, 32], strides = [1, 1]} : vector<8x128xf32> to vector<8x32xf32>
    %cst_49 = arith.constant 5.000000e-01 : f32
    %146 = vector.broadcast %cst_49 : f32 to vector<8x32xf32>
    %147 = arith.mulf %146, %145 : vector<8x32xf32>
    %cst_50 = arith.constant 5.000000e-01 : f32
    %148 = vector.broadcast %cst_50 : f32 to vector<8x32xf32>
    %149 = arith.addf %147, %148 : vector<8x32xf32>
    %150 = vector.extract_strided_slice %139 {offsets = [0, 64], sizes = [8, 32], strides = [1, 1]} : vector<8x128xf32> to vector<8x32xf32>
    %151 = vector.extract_strided_slice %139 {offsets = [0, 96], sizes = [8, 32], strides = [1, 1]} : vector<8x128xf32> to vector<8x32xf32>
    %cst_51 = arith.constant 5.000000e-01 : f32
    %152 = vector.broadcast %cst_51 : f32 to vector<8x32xf32>
    %153 = arith.mulf %152, %151 : vector<8x32xf32>
    %cst_52 = arith.constant 5.000000e-01 : f32
    %154 = vector.broadcast %cst_52 : f32 to vector<8x32xf32>
    %155 = arith.addf %153, %154 : vector<8x32xf32>
    %156 = arith.mulf %149, %133 : vector<8x32xf32>
    %157 = arith.mulf %144, %150 : vector<8x32xf32>
    %158 = arith.addf %156, %157 : vector<8x32xf32>
    %159 = math.tanh %158 : vector<8x32xf32>
    %160 = arith.mulf %155, %159 : vector<8x32xf32>
    %161 = vector.extract_strided_slice %5 {offsets = [48, 0], sizes = [8, 128], strides = [1, 1]} : vector<128x128xf32> to vector<8x128xf32>
    %cst_53 = arith.constant dense<0.000000e+00> : vector<8x128xf32>
    %162 = tpu.matmul %160, %6, %cst_53 {dimension_numbers = #tpu.dot_dimension_numbers<[1], [0], [0], [1], [0, 0, 1, 1], [], []>} : vector<8x32xf32>, vector<32x128xf32>, vector<8x128xf32> -> vector<8x128xf32>
    %163 = arith.addf %161, %162 : vector<8x128xf32>
    %164 = math.tanh %163 : vector<8x128xf32>
    %165 = vector.extract_strided_slice %164 {offsets = [0, 0], sizes = [8, 32], strides = [1, 1]} : vector<8x128xf32> to vector<8x32xf32>
    %cst_54 = arith.constant 5.000000e-01 : f32
    %166 = vector.broadcast %cst_54 : f32 to vector<8x32xf32>
    %167 = arith.mulf %166, %165 : vector<8x32xf32>
    %cst_55 = arith.constant 5.000000e-01 : f32
    %168 = vector.broadcast %cst_55 : f32 to vector<8x32xf32>
    %169 = arith.addf %167, %168 : vector<8x32xf32>
    %170 = vector.extract_strided_slice %164 {offsets = [0, 32], sizes = [8, 32], strides = [1, 1]} : vector<8x128xf32> to vector<8x32xf32>
    %cst_56 = arith.constant 5.000000e-01 : f32
    %171 = vector.broadcast %cst_56 : f32 to vector<8x32xf32>
    %172 = arith.mulf %171, %170 : vector<8x32xf32>
    %cst_57 = arith.constant 5.000000e-01 : f32
    %173 = vector.broadcast %cst_57 : f32 to vector<8x32xf32>
    %174 = arith.addf %172, %173 : vector<8x32xf32>
    %175 = vector.extract_strided_slice %164 {offsets = [0, 64], sizes = [8, 32], strides = [1, 1]} : vector<8x128xf32> to vector<8x32xf32>
    %176 = vector.extract_strided_slice %164 {offsets = [0, 96], sizes = [8, 32], strides = [1, 1]} : vector<8x128xf32> to vector<8x32xf32>
    %cst_58 = arith.constant 5.000000e-01 : f32
    %177 = vector.broadcast %cst_58 : f32 to vector<8x32xf32>
    %178 = arith.mulf %177, %176 : vector<8x32xf32>
    %cst_59 = arith.constant 5.000000e-01 : f32
    %179 = vector.broadcast %cst_59 : f32 to vector<8x32xf32>
    %180 = arith.addf %178, %179 : vector<8x32xf32>
    %181 = arith.mulf %174, %158 : vector<8x32xf32>
    %182 = arith.mulf %169, %175 : vector<8x32xf32>
    %183 = arith.addf %181, %182 : vector<8x32xf32>
    %184 = math.tanh %183 : vector<8x32xf32>
    %185 = arith.mulf %180, %184 : vector<8x32xf32>
    %186 = vector.extract_strided_slice %5 {offsets = [56, 0], sizes = [8, 128], strides = [1, 1]} : vector<128x128xf32> to vector<8x128xf32>
    %cst_60 = arith.constant dense<0.000000e+00> : vector<8x128xf32>
    %187 = tpu.matmul %185, %6, %cst_60 {dimension_numbers = #tpu.dot_dimension_numbers<[1], [0], [0], [1], [0, 0, 1, 1], [], []>} : vector<8x32xf32>, vector<32x128xf32>, vector<8x128xf32> -> vector<8x128xf32>
    %188 = arith.addf %186, %187 : vector<8x128xf32>
    %189 = math.tanh %188 : vector<8x128xf32>
    %190 = vector.extract_strided_slice %189 {offsets = [0, 0], sizes = [8, 32], strides = [1, 1]} : vector<8x128xf32> to vector<8x32xf32>
    %cst_61 = arith.constant 5.000000e-01 : f32
    %191 = vector.broadcast %cst_61 : f32 to vector<8x32xf32>
    %192 = arith.mulf %191, %190 : vector<8x32xf32>
    %cst_62 = arith.constant 5.000000e-01 : f32
    %193 = vector.broadcast %cst_62 : f32 to vector<8x32xf32>
    %194 = arith.addf %192, %193 : vector<8x32xf32>
    %195 = vector.extract_strided_slice %189 {offsets = [0, 32], sizes = [8, 32], strides = [1, 1]} : vector<8x128xf32> to vector<8x32xf32>
    %cst_63 = arith.constant 5.000000e-01 : f32
    %196 = vector.broadcast %cst_63 : f32 to vector<8x32xf32>
    %197 = arith.mulf %196, %195 : vector<8x32xf32>
    %cst_64 = arith.constant 5.000000e-01 : f32
    %198 = vector.broadcast %cst_64 : f32 to vector<8x32xf32>
    %199 = arith.addf %197, %198 : vector<8x32xf32>
    %200 = vector.extract_strided_slice %189 {offsets = [0, 64], sizes = [8, 32], strides = [1, 1]} : vector<8x128xf32> to vector<8x32xf32>
    %201 = vector.extract_strided_slice %189 {offsets = [0, 96], sizes = [8, 32], strides = [1, 1]} : vector<8x128xf32> to vector<8x32xf32>
    %cst_65 = arith.constant 5.000000e-01 : f32
    %202 = vector.broadcast %cst_65 : f32 to vector<8x32xf32>
    %203 = arith.mulf %202, %201 : vector<8x32xf32>
    %cst_66 = arith.constant 5.000000e-01 : f32
    %204 = vector.broadcast %cst_66 : f32 to vector<8x32xf32>
    %205 = arith.addf %203, %204 : vector<8x32xf32>
    %206 = arith.mulf %199, %183 : vector<8x32xf32>
    %207 = arith.mulf %194, %200 : vector<8x32xf32>
    %208 = arith.addf %206, %207 : vector<8x32xf32>
    %209 = math.tanh %208 : vector<8x32xf32>
    %210 = arith.mulf %205, %209 : vector<8x32xf32>
    %211 = tpu.concatenate %135, %160, %185, %210 in 1 : vector<8x32xf32>, vector<8x32xf32>, vector<8x32xf32>, vector<8x32xf32> -> vector<8x128xf32>
    %c0_67 = arith.constant 0 : index
    %c128 = arith.constant 128 : index
    %212 = vector.load %arg4[%c0_67, %c128] : memref<8x512xf32, #tpu.memory_space<vmem>>, vector<8x128xf32>
    tpu.vector_store %arg4[%c0_67, %c128], %211 {strides = array<i32>} : memref<8x512xf32, #tpu.memory_space<vmem>>, vector<8x128xf32>,
    %213 = vector.extract_strided_slice %5 {offsets = [64, 0], sizes = [8, 128], strides = [1, 1]} : vector<128x128xf32> to vector<8x128xf32>
    %cst_68 = arith.constant dense<0.000000e+00> : vector<8x128xf32>
    %214 = tpu.matmul %210, %6, %cst_68 {dimension_numbers = #tpu.dot_dimension_numbers<[1], [0], [0], [1], [0, 0, 1, 1], [], []>} : vector<8x32xf32>, vector<32x128xf32>, vector<8x128xf32> -> vector<8x128xf32>
    %215 = arith.addf %213, %214 : vector<8x128xf32>
    %216 = math.tanh %215 : vector<8x128xf32>
    %217 = vector.extract_strided_slice %216 {offsets = [0, 0], sizes = [8, 32], strides = [1, 1]} : vector<8x128xf32> to vector<8x32xf32>
    %cst_69 = arith.constant 5.000000e-01 : f32
    %218 = vector.broadcast %cst_69 : f32 to vector<8x32xf32>
    %219 = arith.mulf %218, %217 : vector<8x32xf32>
    %cst_70 = arith.constant 5.000000e-01 : f32
    %220 = vector.broadcast %cst_70 : f32 to vector<8x32xf32>
    %221 = arith.addf %219, %220 : vector<8x32xf32>
    %222 = vector.extract_strided_slice %216 {offsets = [0, 32], sizes = [8, 32], strides = [1, 1]} : vector<8x128xf32> to vector<8x32xf32>
    %cst_71 = arith.constant 5.000000e-01 : f32
    %223 = vector.broadcast %cst_71 : f32 to vector<8x32xf32>
    %224 = arith.mulf %223, %222 : vector<8x32xf32>
    %cst_72 = arith.constant 5.000000e-01 : f32
    %225 = vector.broadcast %cst_72 : f32 to vector<8x32xf32>
    %226 = arith.addf %224, %225 : vector<8x32xf32>
    %227 = vector.extract_strided_slice %216 {offsets = [0, 64], sizes = [8, 32], strides = [1, 1]} : vector<8x128xf32> to vector<8x32xf32>
    %228 = vector.extract_strided_slice %216 {offsets = [0, 96], sizes = [8, 32], strides = [1, 1]} : vector<8x128xf32> to vector<8x32xf32>
    %cst_73 = arith.constant 5.000000e-01 : f32
    %229 = vector.broadcast %cst_73 : f32 to vector<8x32xf32>
    %230 = arith.mulf %229, %228 : vector<8x32xf32>
    %cst_74 = arith.constant 5.000000e-01 : f32
    %231 = vector.broadcast %cst_74 : f32 to vector<8x32xf32>
    %232 = arith.addf %230, %231 : vector<8x32xf32>
    %233 = arith.mulf %226, %208 : vector<8x32xf32>
    %234 = arith.mulf %221, %227 : vector<8x32xf32>
    %235 = arith.addf %233, %234 : vector<8x32xf32>
    %236 = math.tanh %235 : vector<8x32xf32>
    %237 = arith.mulf %232, %236 : vector<8x32xf32>
    %238 = vector.extract_strided_slice %5 {offsets = [72, 0], sizes = [8, 128], strides = [1, 1]} : vector<128x128xf32> to vector<8x128xf32>
    %cst_75 = arith.constant dense<0.000000e+00> : vector<8x128xf32>
    %239 = tpu.matmul %237, %6, %cst_75 {dimension_numbers = #tpu.dot_dimension_numbers<[1], [0], [0], [1], [0, 0, 1, 1], [], []>} : vector<8x32xf32>, vector<32x128xf32>, vector<8x128xf32> -> vector<8x128xf32>
    %240 = arith.addf %238, %239 : vector<8x128xf32>
    %241 = math.tanh %240 : vector<8x128xf32>
    %242 = vector.extract_strided_slice %241 {offsets = [0, 0], sizes = [8, 32], strides = [1, 1]} : vector<8x128xf32> to vector<8x32xf32>
    %cst_76 = arith.constant 5.000000e-01 : f32
    %243 = vector.broadcast %cst_76 : f32 to vector<8x32xf32>
    %244 = arith.mulf %243, %242 : vector<8x32xf32>
    %cst_77 = arith.constant 5.000000e-01 : f32
    %245 = vector.broadcast %cst_77 : f32 to vector<8x32xf32>
    %246 = arith.addf %244, %245 : vector<8x32xf32>
    %247 = vector.extract_strided_slice %241 {offsets = [0, 32], sizes = [8, 32], strides = [1, 1]} : vector<8x128xf32> to vector<8x32xf32>
    %cst_78 = arith.constant 5.000000e-01 : f32
    %248 = vector.broadcast %cst_78 : f32 to vector<8x32xf32>
    %249 = arith.mulf %248, %247 : vector<8x32xf32>
    %cst_79 = arith.constant 5.000000e-01 : f32
    %250 = vector.broadcast %cst_79 : f32 to vector<8x32xf32>
    %251 = arith.addf %249, %250 : vector<8x32xf32>
    %252 = vector.extract_strided_slice %241 {offsets = [0, 64], sizes = [8, 32], strides = [1, 1]} : vector<8x128xf32> to vector<8x32xf32>
    %253 = vector.extract_strided_slice %241 {offsets = [0, 96], sizes = [8, 32], strides = [1, 1]} : vector<8x128xf32> to vector<8x32xf32>
    %cst_80 = arith.constant 5.000000e-01 : f32
    %254 = vector.broadcast %cst_80 : f32 to vector<8x32xf32>
    %255 = arith.mulf %254, %253 : vector<8x32xf32>
    %cst_81 = arith.constant 5.000000e-01 : f32
    %256 = vector.broadcast %cst_81 : f32 to vector<8x32xf32>
    %257 = arith.addf %255, %256 : vector<8x32xf32>
    %258 = arith.mulf %251, %235 : vector<8x32xf32>
    %259 = arith.mulf %246, %252 : vector<8x32xf32>
    %260 = arith.addf %258, %259 : vector<8x32xf32>
    %261 = math.tanh %260 : vector<8x32xf32>
    %262 = arith.mulf %257, %261 : vector<8x32xf32>
    %263 = vector.extract_strided_slice %5 {offsets = [80, 0], sizes = [8, 128], strides = [1, 1]} : vector<128x128xf32> to vector<8x128xf32>
    %cst_82 = arith.constant dense<0.000000e+00> : vector<8x128xf32>
    %264 = tpu.matmul %262, %6, %cst_82 {dimension_numbers = #tpu.dot_dimension_numbers<[1], [0], [0], [1], [0, 0, 1, 1], [], []>} : vector<8x32xf32>, vector<32x128xf32>, vector<8x128xf32> -> vector<8x128xf32>
    %265 = arith.addf %263, %264 : vector<8x128xf32>
    %266 = math.tanh %265 : vector<8x128xf32>
    %267 = vector.extract_strided_slice %266 {offsets = [0, 0], sizes = [8, 32], strides = [1, 1]} : vector<8x128xf32> to vector<8x32xf32>
    %cst_83 = arith.constant 5.000000e-01 : f32
    %268 = vector.broadcast %cst_83 : f32 to vector<8x32xf32>
    %269 = arith.mulf %268, %267 : vector<8x32xf32>
    %cst_84 = arith.constant 5.000000e-01 : f32
    %270 = vector.broadcast %cst_84 : f32 to vector<8x32xf32>
    %271 = arith.addf %269, %270 : vector<8x32xf32>
    %272 = vector.extract_strided_slice %266 {offsets = [0, 32], sizes = [8, 32], strides = [1, 1]} : vector<8x128xf32> to vector<8x32xf32>
    %cst_85 = arith.constant 5.000000e-01 : f32
    %273 = vector.broadcast %cst_85 : f32 to vector<8x32xf32>
    %274 = arith.mulf %273, %272 : vector<8x32xf32>
    %cst_86 = arith.constant 5.000000e-01 : f32
    %275 = vector.broadcast %cst_86 : f32 to vector<8x32xf32>
    %276 = arith.addf %274, %275 : vector<8x32xf32>
    %277 = vector.extract_strided_slice %266 {offsets = [0, 64], sizes = [8, 32], strides = [1, 1]} : vector<8x128xf32> to vector<8x32xf32>
    %278 = vector.extract_strided_slice %266 {offsets = [0, 96], sizes = [8, 32], strides = [1, 1]} : vector<8x128xf32> to vector<8x32xf32>
    %cst_87 = arith.constant 5.000000e-01 : f32
    %279 = vector.broadcast %cst_87 : f32 to vector<8x32xf32>
    %280 = arith.mulf %279, %278 : vector<8x32xf32>
    %cst_88 = arith.constant 5.000000e-01 : f32
    %281 = vector.broadcast %cst_88 : f32 to vector<8x32xf32>
    %282 = arith.addf %280, %281 : vector<8x32xf32>
    %283 = arith.mulf %276, %260 : vector<8x32xf32>
    %284 = arith.mulf %271, %277 : vector<8x32xf32>
    %285 = arith.addf %283, %284 : vector<8x32xf32>
    %286 = math.tanh %285 : vector<8x32xf32>
    %287 = arith.mulf %282, %286 : vector<8x32xf32>
    %288 = vector.extract_strided_slice %5 {offsets = [88, 0], sizes = [8, 128], strides = [1, 1]} : vector<128x128xf32> to vector<8x128xf32>
    %cst_89 = arith.constant dense<0.000000e+00> : vector<8x128xf32>
    %289 = tpu.matmul %287, %6, %cst_89 {dimension_numbers = #tpu.dot_dimension_numbers<[1], [0], [0], [1], [0, 0, 1, 1], [], []>} : vector<8x32xf32>, vector<32x128xf32>, vector<8x128xf32> -> vector<8x128xf32>
    %290 = arith.addf %288, %289 : vector<8x128xf32>
    %291 = math.tanh %290 : vector<8x128xf32>
    %292 = vector.extract_strided_slice %291 {offsets = [0, 0], sizes = [8, 32], strides = [1, 1]} : vector<8x128xf32> to vector<8x32xf32>
    %cst_90 = arith.constant 5.000000e-01 : f32
    %293 = vector.broadcast %cst_90 : f32 to vector<8x32xf32>
    %294 = arith.mulf %293, %292 : vector<8x32xf32>
    %cst_91 = arith.constant 5.000000e-01 : f32
    %295 = vector.broadcast %cst_91 : f32 to vector<8x32xf32>
    %296 = arith.addf %294, %295 : vector<8x32xf32>
    %297 = vector.extract_strided_slice %291 {offsets = [0, 32], sizes = [8, 32], strides = [1, 1]} : vector<8x128xf32> to vector<8x32xf32>
    %cst_92 = arith.constant 5.000000e-01 : f32
    %298 = vector.broadcast %cst_92 : f32 to vector<8x32xf32>
    %299 = arith.mulf %298, %297 : vector<8x32xf32>
    %cst_93 = arith.constant 5.000000e-01 : f32
    %300 = vector.broadcast %cst_93 : f32 to vector<8x32xf32>
    %301 = arith.addf %299, %300 : vector<8x32xf32>
    %302 = vector.extract_strided_slice %291 {offsets = [0, 64], sizes = [8, 32], strides = [1, 1]} : vector<8x128xf32> to vector<8x32xf32>
    %303 = vector.extract_strided_slice %291 {offsets = [0, 96], sizes = [8, 32], strides = [1, 1]} : vector<8x128xf32> to vector<8x32xf32>
    %cst_94 = arith.constant 5.000000e-01 : f32
    %304 = vector.broadcast %cst_94 : f32 to vector<8x32xf32>
    %305 = arith.mulf %304, %303 : vector<8x32xf32>
    %cst_95 = arith.constant 5.000000e-01 : f32
    %306 = vector.broadcast %cst_95 : f32 to vector<8x32xf32>
    %307 = arith.addf %305, %306 : vector<8x32xf32>
    %308 = arith.mulf %301, %285 : vector<8x32xf32>
    %309 = arith.mulf %296, %302 : vector<8x32xf32>
    %310 = arith.addf %308, %309 : vector<8x32xf32>
    %311 = math.tanh %310 : vector<8x32xf32>
    %312 = arith.mulf %307, %311 : vector<8x32xf32>
    %313 = tpu.concatenate %237, %262, %287, %312 in 1 : vector<8x32xf32>, vector<8x32xf32>, vector<8x32xf32>, vector<8x32xf32> -> vector<8x128xf32>
    %c0_96 = arith.constant 0 : index
    %c256 = arith.constant 256 : index
    %314 = vector.load %arg4[%c0_96, %c256] : memref<8x512xf32, #tpu.memory_space<vmem>>, vector<8x128xf32>
    tpu.vector_store %arg4[%c0_96, %c256], %313 {strides = array<i32>} : memref<8x512xf32, #tpu.memory_space<vmem>>, vector<8x128xf32>,
    %315 = vector.extract_strided_slice %5 {offsets = [96, 0], sizes = [8, 128], strides = [1, 1]} : vector<128x128xf32> to vector<8x128xf32>
    %cst_97 = arith.constant dense<0.000000e+00> : vector<8x128xf32>
    %316 = tpu.matmul %312, %6, %cst_97 {dimension_numbers = #tpu.dot_dimension_numbers<[1], [0], [0], [1], [0, 0, 1, 1], [], []>} : vector<8x32xf32>, vector<32x128xf32>, vector<8x128xf32> -> vector<8x128xf32>
    %317 = arith.addf %315, %316 : vector<8x128xf32>
    %318 = math.tanh %317 : vector<8x128xf32>
    %319 = vector.extract_strided_slice %318 {offsets = [0, 0], sizes = [8, 32], strides = [1, 1]} : vector<8x128xf32> to vector<8x32xf32>
    %cst_98 = arith.constant 5.000000e-01 : f32
    %320 = vector.broadcast %cst_98 : f32 to vector<8x32xf32>
    %321 = arith.mulf %320, %319 : vector<8x32xf32>
    %cst_99 = arith.constant 5.000000e-01 : f32
    %322 = vector.broadcast %cst_99 : f32 to vector<8x32xf32>
    %323 = arith.addf %321, %322 : vector<8x32xf32>
    %324 = vector.extract_strided_slice %318 {offsets = [0, 32], sizes = [8, 32], strides = [1, 1]} : vector<8x128xf32> to vector<8x32xf32>
    %cst_100 = arith.constant 5.000000e-01 : f32
    %325 = vector.broadcast %cst_100 : f32 to vector<8x32xf32>
    %326 = arith.mulf %325, %324 : vector<8x32xf32>
    %cst_101 = arith.constant 5.000000e-01 : f32
    %327 = vector.broadcast %cst_101 : f32 to vector<8x32xf32>
    %328 = arith.addf %326, %327 : vector<8x32xf32>
    %329 = vector.extract_strided_slice %318 {offsets = [0, 64], sizes = [8, 32], strides = [1, 1]} : vector<8x128xf32> to vector<8x32xf32>
    %330 = vector.extract_strided_slice %318 {offsets = [0, 96], sizes = [8, 32], strides = [1, 1]} : vector<8x128xf32> to vector<8x32xf32>
    %cst_102 = arith.constant 5.000000e-01 : f32
    %331 = vector.broadcast %cst_102 : f32 to vector<8x32xf32>
    %332 = arith.mulf %331, %330 : vector<8x32xf32>
    %cst_103 = arith.constant 5.000000e-01 : f32
    %333 = vector.broadcast %cst_103 : f32 to vector<8x32xf32>
    %334 = arith.addf %332, %333 : vector<8x32xf32>
    %335 = arith.mulf %328, %310 : vector<8x32xf32>
    %336 = arith.mulf %323, %329 : vector<8x32xf32>
    %337 = arith.addf %335, %336 : vector<8x32xf32>
    %338 = math.tanh %337 : vector<8x32xf32>
    %339 = arith.mulf %334, %338 : vector<8x32xf32>
    %340 = vector.extract_strided_slice %5 {offsets = [104, 0], sizes = [8, 128], strides = [1, 1]} : vector<128x128xf32> to vector<8x128xf32>
    %cst_104 = arith.constant dense<0.000000e+00> : vector<8x128xf32>
    %341 = tpu.matmul %339, %6, %cst_104 {dimension_numbers = #tpu.dot_dimension_numbers<[1], [0], [0], [1], [0, 0, 1, 1], [], []>} : vector<8x32xf32>, vector<32x128xf32>, vector<8x128xf32> -> vector<8x128xf32>
    %342 = arith.addf %340, %341 : vector<8x128xf32>
    %343 = math.tanh %342 : vector<8x128xf32>
    %344 = vector.extract_strided_slice %343 {offsets = [0, 0], sizes = [8, 32], strides = [1, 1]} : vector<8x128xf32> to vector<8x32xf32>
    %cst_105 = arith.constant 5.000000e-01 : f32
    %345 = vector.broadcast %cst_105 : f32 to vector<8x32xf32>
    %346 = arith.mulf %345, %344 : vector<8x32xf32>
    %cst_106 = arith.constant 5.000000e-01 : f32
    %347 = vector.broadcast %cst_106 : f32 to vector<8x32xf32>
    %348 = arith.addf %346, %347 : vector<8x32xf32>
    %349 = vector.extract_strided_slice %343 {offsets = [0, 32], sizes = [8, 32], strides = [1, 1]} : vector<8x128xf32> to vector<8x32xf32>
    %cst_107 = arith.constant 5.000000e-01 : f32
    %350 = vector.broadcast %cst_107 : f32 to vector<8x32xf32>
    %351 = arith.mulf %350, %349 : vector<8x32xf32>
    %cst_108 = arith.constant 5.000000e-01 : f32
    %352 = vector.broadcast %cst_108 : f32 to vector<8x32xf32>
    %353 = arith.addf %351, %352 : vector<8x32xf32>
    %354 = vector.extract_strided_slice %343 {offsets = [0, 64], sizes = [8, 32], strides = [1, 1]} : vector<8x128xf32> to vector<8x32xf32>
    %355 = vector.extract_strided_slice %343 {offsets = [0, 96], sizes = [8, 32], strides = [1, 1]} : vector<8x128xf32> to vector<8x32xf32>
    %cst_109 = arith.constant 5.000000e-01 : f32
    %356 = vector.broadcast %cst_109 : f32 to vector<8x32xf32>
    %357 = arith.mulf %356, %355 : vector<8x32xf32>
    %cst_110 = arith.constant 5.000000e-01 : f32
    %358 = vector.broadcast %cst_110 : f32 to vector<8x32xf32>
    %359 = arith.addf %357, %358 : vector<8x32xf32>
    %360 = arith.mulf %353, %337 : vector<8x32xf32>
    %361 = arith.mulf %348, %354 : vector<8x32xf32>
    %362 = arith.addf %360, %361 : vector<8x32xf32>
    %363 = math.tanh %362 : vector<8x32xf32>
    %364 = arith.mulf %359, %363 : vector<8x32xf32>
    %365 = vector.extract_strided_slice %5 {offsets = [112, 0], sizes = [8, 128], strides = [1, 1]} : vector<128x128xf32> to vector<8x128xf32>
    %cst_111 = arith.constant dense<0.000000e+00> : vector<8x128xf32>
    %366 = tpu.matmul %364, %6, %cst_111 {dimension_numbers = #tpu.dot_dimension_numbers<[1], [0], [0], [1], [0, 0, 1, 1], [], []>} : vector<8x32xf32>, vector<32x128xf32>, vector<8x128xf32> -> vector<8x128xf32>
    %367 = arith.addf %365, %366 : vector<8x128xf32>
    %368 = math.tanh %367 : vector<8x128xf32>
    %369 = vector.extract_strided_slice %368 {offsets = [0, 0], sizes = [8, 32], strides = [1, 1]} : vector<8x128xf32> to vector<8x32xf32>
    %cst_112 = arith.constant 5.000000e-01 : f32
    %370 = vector.broadcast %cst_112 : f32 to vector<8x32xf32>
    %371 = arith.mulf %370, %369 : vector<8x32xf32>
    %cst_113 = arith.constant 5.000000e-01 : f32
    %372 = vector.broadcast %cst_113 : f32 to vector<8x32xf32>
    %373 = arith.addf %371, %372 : vector<8x32xf32>
    %374 = vector.extract_strided_slice %368 {offsets = [0, 32], sizes = [8, 32], strides = [1, 1]} : vector<8x128xf32> to vector<8x32xf32>
    %cst_114 = arith.constant 5.000000e-01 : f32
    %375 = vector.broadcast %cst_114 : f32 to vector<8x32xf32>
    %376 = arith.mulf %375, %374 : vector<8x32xf32>
    %cst_115 = arith.constant 5.000000e-01 : f32
    %377 = vector.broadcast %cst_115 : f32 to vector<8x32xf32>
    %378 = arith.addf %376, %377 : vector<8x32xf32>
    %379 = vector.extract_strided_slice %368 {offsets = [0, 64], sizes = [8, 32], strides = [1, 1]} : vector<8x128xf32> to vector<8x32xf32>
    %380 = vector.extract_strided_slice %368 {offsets = [0, 96], sizes = [8, 32], strides = [1, 1]} : vector<8x128xf32> to vector<8x32xf32>
    %cst_116 = arith.constant 5.000000e-01 : f32
    %381 = vector.broadcast %cst_116 : f32 to vector<8x32xf32>
    %382 = arith.mulf %381, %380 : vector<8x32xf32>
    %cst_117 = arith.constant 5.000000e-01 : f32
    %383 = vector.broadcast %cst_117 : f32 to vector<8x32xf32>
    %384 = arith.addf %382, %383 : vector<8x32xf32>
    %385 = arith.mulf %378, %362 : vector<8x32xf32>
    %386 = arith.mulf %373, %379 : vector<8x32xf32>
    %387 = arith.addf %385, %386 : vector<8x32xf32>
    %388 = math.tanh %387 : vector<8x32xf32>
    %389 = arith.mulf %384, %388 : vector<8x32xf32>
    %390 = vector.extract_strided_slice %5 {offsets = [120, 0], sizes = [8, 128], strides = [1, 1]} : vector<128x128xf32> to vector<8x128xf32>
    %cst_118 = arith.constant dense<0.000000e+00> : vector<8x128xf32>
    %391 = tpu.matmul %389, %6, %cst_118 {dimension_numbers = #tpu.dot_dimension_numbers<[1], [0], [0], [1], [0, 0, 1, 1], [], []>} : vector<8x32xf32>, vector<32x128xf32>, vector<8x128xf32> -> vector<8x128xf32>
    %392 = arith.addf %390, %391 : vector<8x128xf32>
    %393 = math.tanh %392 : vector<8x128xf32>
    %394 = vector.extract_strided_slice %393 {offsets = [0, 0], sizes = [8, 32], strides = [1, 1]} : vector<8x128xf32> to vector<8x32xf32>
    %cst_119 = arith.constant 5.000000e-01 : f32
    %395 = vector.broadcast %cst_119 : f32 to vector<8x32xf32>
    %396 = arith.mulf %395, %394 : vector<8x32xf32>
    %cst_120 = arith.constant 5.000000e-01 : f32
    %397 = vector.broadcast %cst_120 : f32 to vector<8x32xf32>
    %398 = arith.addf %396, %397 : vector<8x32xf32>
    %399 = vector.extract_strided_slice %393 {offsets = [0, 32], sizes = [8, 32], strides = [1, 1]} : vector<8x128xf32> to vector<8x32xf32>
    %cst_121 = arith.constant 5.000000e-01 : f32
    %400 = vector.broadcast %cst_121 : f32 to vector<8x32xf32>
    %401 = arith.mulf %400, %399 : vector<8x32xf32>
    %cst_122 = arith.constant 5.000000e-01 : f32
    %402 = vector.broadcast %cst_122 : f32 to vector<8x32xf32>
    %403 = arith.addf %401, %402 : vector<8x32xf32>
    %404 = vector.extract_strided_slice %393 {offsets = [0, 64], sizes = [8, 32], strides = [1, 1]} : vector<8x128xf32> to vector<8x32xf32>
    %405 = vector.extract_strided_slice %393 {offsets = [0, 96], sizes = [8, 32], strides = [1, 1]} : vector<8x128xf32> to vector<8x32xf32>
    %cst_123 = arith.constant 5.000000e-01 : f32
    %406 = vector.broadcast %cst_123 : f32 to vector<8x32xf32>
    %407 = arith.mulf %406, %405 : vector<8x32xf32>
    %cst_124 = arith.constant 5.000000e-01 : f32
    %408 = vector.broadcast %cst_124 : f32 to vector<8x32xf32>
    %409 = arith.addf %407, %408 : vector<8x32xf32>
    %410 = arith.mulf %403, %387 : vector<8x32xf32>
    %411 = arith.mulf %398, %404 : vector<8x32xf32>
    %412 = arith.addf %410, %411 : vector<8x32xf32>
    %413 = math.tanh %412 : vector<8x32xf32>
    %414 = arith.mulf %409, %413 : vector<8x32xf32>
    %415 = tpu.concatenate %339, %364, %389, %414 in 1 : vector<8x32xf32>, vector<8x32xf32>, vector<8x32xf32>, vector<8x32xf32> -> vector<8x128xf32>
    %c0_125 = arith.constant 0 : index
    %c384 = arith.constant 384 : index
    %416 = vector.load %arg4[%c0_125, %c384] : memref<8x512xf32, #tpu.memory_space<vmem>>, vector<8x128xf32>
    tpu.vector_store %arg4[%c0_125, %c384], %415 {strides = array<i32>} : memref<8x512xf32, #tpu.memory_space<vmem>>, vector<8x128xf32>,
    return
  }
}

</mosaic_0001>

<bundles_post_ra>
// kernel: tpu_custom_call.1
= control target key start
LH: loop header
LB: loop body
LE: loop exit
PB: predicated region body
PF: predicated region fallthrough
CT: control target
= control target key end

     0   :  { %vm88_vm0 = vcmask 1043456   ;;  %vm39_vm1 = vcmask 31744   ;;  %s1468_s0 = inlined_call_operand.vmem [shape: f32[128,4], index: 0, kind: input, shape index: {}]   ;;  %s1469_s1 = inlined_call_operand.vmem [shape: f32[4,128], index: 1, kind: input, shape index: {}]   ;;  %s1470_s2 = inlined_call_operand.vmem [shape: f32[32,128], index: 2, kind: input, shape index: {}]   ;;  %s1471_s3 = inlined_call_operand.vmem [shape: f32[1,128], index: 3, kind: input, shape index: {}]   ;;  %s1472_s4 = inlined_call_operand.hbm [shape: f32[8,512], index: 4, kind: output, shape index: {}]  }
   0x1   :  { %v34_v0 = vld [vmem:[%s1469_s1] sm:$0xf]  ;;  %v1128_v2 = vld [vmem:[%s1470_s2 + $0x18] sm:$0xff]  ;;  %v1134_v3 = vld [vmem:[%s1470_s2 + $0x10] sm:$0xff] }
   0x2   :  { %v26_v1 = vld [vmem:[%s1468_s0 + $0x40] sm:$0xff]  ;;  %990 = vmatpush.msk.msra.mxu1 %vm88_vm0, %v34_v0  ;;  %958 = vmatpush.msk.msra.mxu0 %vm88_vm0, %v34_v0 }
   0x3   :  { %967 = vmatmul.msk.f32.vlgmr.msra.gmra.mxu1 %vm39_vm1, %v26_v1  ;;  %v18_v4 = vld [vmem:[%s1468_s0] sm:$0xff]  ;;  %991 = vmatpush.msk.msra.mxu2 %vm88_vm0, %v34_v0 }
   0x4   :  { %177 = vmatpush.msrb.mxu1 %v1128_v2  ;;  %959 = vmatmul.msk.f32.vlgmr.msra.gmra.mxu0 %vm39_vm1, %v18_v4 }
   0x5   :  { %9 = vsyncpa [#allocation3], 0  ;;  %v1144_v5 = vld [vmem:[%s1470_s2 + $0x8] sm:$0xff]  ;;  %223 = vmatpush.msrb.mxu2 %v1128_v2  ;;  %992 = vmatpush.msk.msra.mxu3 %vm88_vm0, %v34_v0  ;;  %v1152_v6 = vld [vmem:[%s1470_s2] sm:$0xff]  ;;  %v1089_v8 = vmov 0.0   ;;  %s1090_s5 = smov 64  }
   0x6   :  { %178 = vmatpush.msrb.mxu1 %v1134_v3  ;;  %v27_v7 = vld [vmem:[%s1468_s0 + $0x48] sm:$0xff]  ;;  %v1181_v12 = vld [vmem:[%s1471_s3] ss:$0 sm:$0xff]  ;;  %s1091_s6 = smov 32   ;;  %v28_v25 = vld [vmem:[%s1468_s0 + $0x50] sm:$0xff]  ;;  %vm161_vm2 = vcmask 261120  }
   0x7   :  { %269 = vmatpush.msrb.mxu3 %v1128_v2  ;;  %224 = vmatpush.msrb.mxu2 %v1134_v3  ;;  %v29_v26 = vld [vmem:[%s1468_s0 + $0x58] sm:$0xff]  ;;  %v30_v27 = vld [vmem:[%s1468_s0 + $0x60] sm:$0xff]  ;;  %v19_v30 = vld [vmem:[%s1468_s0 + $0x8] sm:$0xff]  ;;  %vm352_vm3 = vcmask 523264   ;;  %vm354_vm4 = vcmask 785408   ;;  %s1093_s30 = smov [#allocation2]  }
   0x8   :  { %179 = vmatpush.msrb.mxu1 %v1144_v5  ;;  %969 = vmatmul.msk.f32.vlgmr.msra.gmra.mxu2 %vm39_vm1, %v28_v25  ;;  %v31_v48 = vld [vmem:[%s1468_s0 + $0x68] sm:$0xff]  ;;  %v32_v49 = vld [vmem:[%s1468_s0 + $0x70] sm:$0xff]  ;;  %v33_v50 = vld [vmem:[%s1468_s0 + $0x78] sm:$0xff]  ;;  %s949_s7 = sshll.u32 %s1472_s4, 4  ;;  %s950_s7 = int_to_ptr.hbm [resolvable:$true] %s949_s7 }
   0x9   :  { %270 = vmatpush.msrb.mxu3 %v1134_v3  ;;  %225 = vmatpush.msrb.mxu2 %v1144_v5  ;;  %v20_v53 = vld [vmem:[%s1468_s0 + $0x10] sm:$0xff] }
   0xa   :  { %180 = vmatpush.msrb.mxu1 %v1152_v6  ;;  %972 = vmatmul.msk.f32.vlgmr.msra.gmra.mxu3 %vm39_vm1, %v31_v48 }
   0xb   :  { %271 = vmatpush.msrb.mxu3 %v1144_v5  ;;  %968 = vmatmul.msk.f32.gmra.mxu1 %vm39_vm1, %v27_v7 }
   0xc   :  { %226 = vmatpush.msrb.mxu2 %v1152_v6  ;;  %315 = vmatpush.msra.mxu1 %v1128_v2 }
   0xd   :  { %272 = vmatpush.msrb.mxu3 %v1152_v6  ;;  %960 = vmatmul.msk.f32.gmra.mxu0 %vm39_vm1, %v19_v30 }
   0xe   :  { %316 = vmatpush.msra.mxu1 %v1134_v3  ;;  %374 = vmatpush.msra.mxu2 %v1128_v2 }
   0xf   :  { %420 = vmatpush.msra.mxu3 %v1128_v2 }
  0x10   :  { %317 = vmatpush.msra.mxu1 %v1144_v5  ;;  %375 = vmatpush.msra.mxu2 %v1134_v3 }
  0x11   :  { %970 = vmatmul.msk.f32.gmra.mxu2 %vm39_vm1, %v29_v26  ;;  %421 = vmatpush.msra.mxu3 %v1134_v3 }
  0x12   :  { %318 = vmatpush.msra.mxu1 %v1152_v6  ;;  %376 = vmatpush.msra.mxu2 %v1144_v5 }
  0x13   :  { %181 = vmatmul.f32.vlgmr.msrb.gmra.mxu1 %v1089_v8  ;;  %422 = vmatpush.msra.mxu3 %v1144_v5 }
  0x14   :  { %466 = vmatpush.msrb.mxu1 %v1128_v2  ;;  %377 = vmatpush.msra.mxu2 %v1152_v6 }
  0x15   :  { %423 = vmatpush.msra.mxu3 %v1152_v6  ;;  %961 = vmatmul.msk.f32.gmra.mxu0 %vm39_vm1, %v20_v53 }
  0x16   :  { %467 = vmatpush.msrb.mxu1 %v1134_v3  ;;  %973 = vmatmul.msk.f32.gmra.mxu3 %vm39_vm1, %v32_v49 }
  0x18   :  { %468 = vmatpush.msrb.mxu1 %v1144_v5 }
  0x19   :  { %971 = vmatmul.msk.f32.gmra.mxu2 %vm39_vm1, %v30_v27 }
  0x1a   :  { %469 = vmatpush.msrb.mxu1 %v1152_v6 }
  0x1e   :  { %974 = vmatmul.msk.f32.gmra.mxu3 %vm39_vm1, %v33_v50 }
  0x80   :  { %v1174_v9 = vpop.f32.mrf.mxu1 }
  0x81   :  { %v109_v11 = vpop.f32.mrf.mxu0 }
  0x82   :  { %v110_v13 = vadd.f32 %v1181_v12, %v109_v11 }
  0x88   :  { %v1176_v10 = vpop.f32.mrf.mxu1 }
  0x8a   :  { %v112_v35 = vpop.f32.mrf.mxu0 }
  0x8b   :  { %v1216_v32 = vpop.f32.mrf.mxu2  ;;  %v113_v36 = vadd.f32 %v1181_v12, %v112_v35 }
  0x8d   :  { %v1255_v55 = vpop.f32.mrf.mxu3 }
  0x90   :  { %v182_v14 = vpop.f32.mrf.mxu1 }
  0x91   :  { %v185_v15 = vadd.f32 %v182_v14, %v110_v13  ;;  %v21_v14 = vld [vmem:[%s1468_s0 + $0x18] sm:$0xff] }
  0x92   :  { %v115_v58 = vpop.f32.mrf.mxu0  ;;  %962 = vmatmul.msk.f32.gmra.mxu0 %vm39_vm1, %v21_v14 }
  0x93   :  { %999 = vtanh.f32 %v185_v15  ;;  %v116_v59 = vadd.f32 %v1181_v12, %v115_v58  ;;  %v23_v58 = vld [vmem:[%s1468_s0 + $0x28] sm:$0xff] }
  0x94   :  { %v1218_v33 = vpop.f32.mrf.mxu2 }
  0x99   :  { %v1000_v16 = vpop.eup %999  ;;  %v1257_v56 = vpop.f32.mrf.mxu3 }
  0x9a   :  { %191 = vrot.lane.b32.xlu0 %v1000_v16, %s1090_s5  ;;  %v187_v17 = vmul.f32 0.5, %v1000_v16 }
  0x9c   :  { %v188_v18 = vadd.f32 0.5, %v187_v17  ;;  %v1220_v34 = vpop.f32.mrf.mxu2 }
  0x9e   :  { %v189_v21 = vmul.f32 0.0, %v188_v18 }
  0xa1   :  { %v1259_v57 = vpop.f32.mrf.mxu3 }
 0x10c   :  { %v192_v19 = vpop.permute.xlu0 %191 }
 0x10d   :  { %v194_v20 = vmul.f32 %v192_v19, %v188_v18 }
 0x10f   :  { %196 = vrot.lane.b32.xlu0 %v194_v20, %s1091_s6 }
 0x181   :  { %v197_v22 = vpop.permute.xlu0 %196 }
 0x182   :  { %v199_v23 = vadd.f32 %v197_v22, %v189_v21 }
 0x184   :  { %1001 = vtanh.f32 %v199_v23 }
 0x18a   :  { %v1002_v24 = vpop.eup %1001 }
 0x18b   :  { %202 = vrot.lane.b32.xlu1 %v1002_v24, %s1090_s5 }
 0x1fd   :  { %v203_v28 = vpop.permute.xlu1 %202 }
 0x1fe   :  { %v205_v29 = vmul.f32 %v203_v28, %v188_v18  ;;  %v118_v18 = vpop.f32.mrf.mxu0 }
 0x1ff   :  { %v119_v19 = vadd.f32 %v1181_v12, %v118_v18 }
 0x200   :  { %207 = vrot.lane.b32.xlu1 %v205_v29, %s1091_s6 }
 0x272   :  { %v1208_v31 = vpop.permute.xlu1 %207 }
 0x273   :  { %975 = vmatmul.msk.f32.vlgmr.msrb.gmra.mxu2 %vm161_vm2, %v1208_v31 }
 0x274   :  { %512 = vmatpush.msrb.mxu2 %v1128_v2 }
 0x276   :  { %513 = vmatpush.msrb.mxu2 %v1134_v3 }
 0x278   :  { %514 = vmatpush.msrb.mxu2 %v1144_v5 }
 0x27a   :  { %515 = vmatpush.msrb.mxu2 %v1152_v6 }
 0x2f6   :  { %v228_v37 = vpop.f32.mrf.mxu2 }
 0x2f7   :  { %v231_v38 = vadd.f32 %v228_v37, %v113_v36  ;;  %v22_v37 = vld [vmem:[%s1468_s0 + $0x20] sm:$0xff] }
 0x2f8   :  { %963 = vmatmul.msk.f32.gmra.mxu0 %vm39_vm1, %v22_v37 }
 0x2f9   :  { %1003 = vtanh.f32 %v231_v38 }
 0x2ff   :  { %v1004_v39 = vpop.eup %1003 }
 0x300   :  { %237 = vrot.lane.b32.xlu2 %v1004_v39, %s1090_s5  ;;  %v233_v40 = vmul.f32 0.5, %v1004_v39  ;;  %964 = vmatmul.msk.f32.gmra.mxu0 %vm39_vm1, %v23_v58 }
 0x302   :  { %v234_v41 = vadd.f32 0.5, %v233_v40 }
 0x304   :  { %v235_v44 = vmul.f32 %v234_v41, %v199_v23 }
 0x35a   :  { %v238_v42 = vpop.permute.xlu2 %237 }
 0x35b   :  { %v240_v43 = vmul.f32 %v238_v42, %v234_v41 }
 0x35d   :  { %242 = vrot.lane.b32.xlu2 %v240_v43, %s1091_s6 }
 0x375   :  { %v121_v39 = vpop.f32.mrf.mxu0 }
 0x376   :  { %v122_v40 = vadd.f32 %v1181_v12, %v121_v39 }
 0x3b7   :  { %v243_v45 = vpop.permute.xlu2 %242 }
 0x3b8   :  { %v245_v46 = vadd.f32 %v243_v45, %v235_v44 }
 0x3ba   :  { %1005 = vtanh.f32 %v245_v46 }
 0x3c0   :  { %v1006_v47 = vpop.eup %1005 }
 0x3c1   :  { %248 = vrot.lane.b32.xlu0 %v1006_v47, %s1090_s5 }
 0x433   :  { %v249_v51 = vpop.permute.xlu0 %248 }
 0x434   :  { %v1242_v52 = vmul.f32 %v249_v51, %v234_v41 }
 0x436   :  { %253 = vrot.lane.b32.xlu1 %v1242_v52, %s1091_s6 }
 0x4a8   :  { %v254_v54 = vpop.permute.xlu1 %253 }
 0x4a9   :  { %976 = vmatmul.msk.f32.vlgmr.msrb.gmra.mxu3 %vm161_vm2, %v254_v54 }
 0x4aa   :  { %569 = vmatpush.msrb.mxu3 %v1128_v2 }
 0x4ac   :  { %570 = vmatpush.msrb.mxu3 %v1134_v3 }
 0x4ae   :  { %571 = vmatpush.msrb.mxu3 %v1144_v5 }
 0x4b0   :  { %572 = vmatpush.msrb.mxu3 %v1152_v6 }
 0x52c   :  { %v274_v60 = vpop.f32.mrf.mxu3 }
 0x52d   :  { %v277_v61 = vadd.f32 %v274_v60, %v116_v59  ;;  %v124_v60 = vpop.f32.mrf.mxu0 }
 0x52f   :  { %1007 = vtanh.f32 %v277_v61  ;;  %v125_v61 = vadd.f32 %v1181_v12, %v124_v60 }
 0x535   :  { %v1008_v62 = vpop.eup %1007 }
 0x536   :  { %283 = vrot.lane.b32.xlu2 %v1008_v62, %s1090_s5  ;;  %v279_v63 = vmul.f32 0.5, %v1008_v62 }
 0x538   :  { %v280_v0 = vadd.f32 0.5, %v279_v63 }
 0x53a   :  { %v281_v7 = vmul.f32 %v280_v0, %v245_v46 }
 0x590   :  { %v284_v1 = vpop.permute.xlu2 %283 }
 0x591   :  { %v286_v4 = vmul.f32 %v284_v1, %v280_v0 }
 0x593   :  { %288 = vrot.lane.b32.xlu0 %v286_v4, %s1091_s6 }
 0x605   :  { %v289_v8 = vpop.permute.xlu0 %288 }
 0x606   :  { %v291_v11 = vadd.f32 %v289_v8, %v281_v7 }
 0x608   :  { %1009 = vtanh.f32 %v291_v11 }
 0x60e   :  { %v1010_v13 = vpop.eup %1009 }
 0x60f   :  { %294 = vrot.lane.b32.xlu1 %v1010_v13, %s1090_s5 }
 0x681   :  { %v295_v15 = vpop.permute.xlu1 %294 }
 0x682   :  { %v1269_v16 = vmul.f32 %v295_v15, %v280_v0 }
 0x684   :  { %299 = vrot.lane.b32.xlu2 %v1269_v16, %s1091_s6 }
 0x6de   :  { %v300_v17 = vpop.permute.xlu2 %299 }
 0x6df   :  { %977 = vmatmul.msk.f32.vlgmr.msra.gmra.mxu1 %vm161_vm2, %v300_v17  ;;  %v24_v17 = vld [vmem:[%s1468_s0 + $0x30] sm:$0xff] }
 0x6e0   :  { %615 = vmatpush.msra.mxu1 %v1128_v2  ;;  %965 = vmatmul.msk.f32.gmra.mxu0 %vm39_vm1, %v24_v17 }
 0x6e2   :  { %616 = vmatpush.msra.mxu1 %v1134_v3 }
 0x6e4   :  { %617 = vmatpush.msra.mxu1 %v1144_v5 }
 0x6e6   :  { %618 = vmatpush.msra.mxu1 %v1152_v6 }
 0x75c   :  { %v320_v20 = vpop.f32.mrf.mxu1 }
 0x75d   :  { %v323_v21 = vadd.f32 %v320_v20, %v119_v19 }
 0x75f   :  { %1011 = vtanh.f32 %v323_v21  ;;  %v127_v21 = vpop.f32.mrf.mxu0 }
 0x765   :  { %v1012_v22 = vpop.eup %1011 }
 0x766   :  { %329 = vrot.lane.b32.xlu0 %v1012_v22, %s1090_s5  ;;  %v325_v23 = vmul.f32 0.5, %v1012_v22  ;;  %v128_v22 = vadd.f32 %v1181_v12, %v127_v21 }
 0x768   :  { %v326_v24 = vadd.f32 0.5, %v325_v23 }
 0x76a   :  { %v327_v27 = vmul.f32 %v326_v24, %v291_v11 }
 0x7d8   :  { %v330_v25 = vpop.permute.xlu0 %329 }
 0x7d9   :  { %v332_v26 = vmul.f32 %v330_v25, %v326_v24 }
 0x7db   :  { %334 = vrot.lane.b32.xlu1 %v332_v26, %s1091_s6 }
 0x84d   :  { %v335_v28 = vpop.permute.xlu1 %334 }
 0x84e   :  { %v337_v29 = vadd.f32 %v335_v28, %v327_v27 }
 0x850   :  { %1013 = vtanh.f32 %v337_v29 }
 0x856   :  { %v1014_v30 = vpop.eup %1013 }
 0x857   :  { %340 = vrot.lane.b32.xlu2 %v1014_v30, %s1090_s5 }
 0x8b1   :  { %v341_v35 = vpop.permute.xlu2 %340 }
 0x8b2   :  { %v1282_v36 = vmul.f32 %v341_v35, %v326_v24 }
 0x8b4   :  { %358 = vrot.lane.b32.xlu0 %v1282_v36, %s1091_s6 }
 0x926   :  { %v359_v38 = vpop.permute.xlu0 %358 }
 0x927   :  { %978 = vmatmul.msk.f32.vlgmr.msra.gmra.mxu2 %vm161_vm2, %v359_v38 }
 0x928   :  { %661 = vmatpush.msra.mxu2 %v1128_v2 }
 0x92a   :  { %662 = vmatpush.msra.mxu2 %v1134_v3 }
 0x92c   :  { %663 = vmatpush.msra.mxu2 %v1144_v5 }
 0x92e   :  { %664 = vmatpush.msra.mxu2 %v1152_v6 }
 0x9aa   :  { %v379_v41 = vpop.f32.mrf.mxu2 }
 0x9ab   :  { %v382_v42 = vadd.f32 %v379_v41, %v122_v40  ;;  %v25_v41 = vld [vmem:[%s1468_s0 + $0x38] sm:$0xff]  ;;  %s1092_s0 = smov 96  }
 0x9ac   :  { %966 = vmatmul.msk.f32.gmra.mxu0 %vm39_vm1, %v25_v41 }
 0x9ad   :  { %1015 = vtanh.f32 %v382_v42 }
 0x9b3   :  { %v1016_v43 = vpop.eup %1015 }
 0x9b4   :  { %388 = vrot.lane.b32.xlu1 %v1016_v43, %s1090_s5  ;;  %v384_v44 = vmul.f32 0.5, %v1016_v43 }
 0x9b6   :  { %v385_v45 = vadd.f32 0.5, %v384_v44 }
 0x9b8   :  { %v386_v48 = vmul.f32 %v385_v45, %v337_v29 }
 0xa26   :  { %v389_v46 = vpop.permute.xlu1 %388 }
 0xa27   :  { %v391_v47 = vmul.f32 %v389_v46, %v385_v45 }
 0xa29   :  { %393 = vrot.lane.b32.xlu2 %v391_v47, %s1091_s6  ;;  %v130_v43 = vpop.f32.mrf.mxu0 }
 0xa2a   :  { %v131_v44 = vadd.f32 %v1181_v12, %v130_v43 }
 0xa83   :  { %v394_v49 = vpop.permute.xlu2 %393 }
 0xa84   :  { %v396_v50 = vadd.f32 %v394_v49, %v386_v48 }
 0xa86   :  { %1017 = vtanh.f32 %v396_v50 }
 0xa8c   :  { %v1018_v51 = vpop.eup %1017 }
 0xa8d   :  { %399 = vrot.lane.b32.xlu0 %v1018_v51, %s1090_s5 }
 0xaff   :  { %v400_v53 = vpop.permute.xlu0 %399 }
 0xb00   :  { %v402_v54 = vmul.f32 %v400_v53, %v385_v45 }
 0xb02   :  { %404 = vrot.lane.b32.xlu1 %v402_v54, %s1091_s6 }
 0xb74   :  { %v1304_v59 = vpop.permute.xlu1 %404 }
 0xb75   :  { %979 = vmatmul.msk.f32.vlgmr.msra.gmra.mxu3 %vm161_vm2, %v1304_v59 }
 0xb76   :  { %707 = vmatpush.msra.mxu3 %v1128_v2 }
 0xb78   :  { %708 = vmatpush.msra.mxu3 %v1134_v3 }
 0xb7a   :  { %709 = vmatpush.msra.mxu3 %v1144_v5 }
 0xb7c   :  { %710 = vmatpush.msra.mxu3 %v1152_v6 }
 0xbf8   :  { %v425_v62 = vpop.f32.mrf.mxu3 }
 0xbf9   :  { %v428_v63 = vadd.f32 %v425_v62, %v125_v61 }
 0xbfb   :  { %1019 = vtanh.f32 %v428_v63 }
 0xc01   :  { %v1020_v0 = vpop.eup %1019 }
 0xc02   :  { %434 = vrot.lane.b32.xlu2 %v1020_v0, %s1090_s5  ;;  %v430_v1 = vmul.f32 0.5, %v1020_v0  ;;  %v134_v0 = vadd.f32 %v1181_v12, %v1174_v9 }
 0xc04   :  { %v431_v4 = vadd.f32 0.5, %v430_v1 }
 0xc06   :  { %v432_v11 = vmul.f32 %v431_v4, %v396_v50 }
 0xc5c   :  { %v435_v7 = vpop.permute.xlu2 %434 }
 0xc5d   :  { %v437_v8 = vmul.f32 %v435_v7, %v431_v4 }
 0xc5f   :  { %439 = vrot.lane.b32.xlu0 %v437_v8, %s1091_s6 }
 0xcd1   :  { %v440_v13 = vpop.permute.xlu0 %439 }
 0xcd2   :  { %v442_v14 = vadd.f32 %v440_v13, %v432_v11 }
 0xcd4   :  { %1021 = vtanh.f32 %v442_v14 }
 0xcda   :  { %v1022_v15 = vpop.eup %1021 }
 0xcdb   :  { %445 = vrot.lane.b32.xlu1 %v1022_v15, %s1090_s5 }
 0xd4d   :  { %v446_v18 = vpop.permute.xlu1 %445 }
 0xd4e   :  { %v1320_v19 = vmul.f32 %v446_v18, %v431_v4 }
 0xd50   :  { %450 = vrot.lane.b32.xlu2 %v1320_v19, %s1091_s6 }
 0xdaa   :  { %v451_v20 = vpop.permute.xlu2 %450 }
 0xdab   :  { %980 = vmatmul.msk.f32.vlgmr.msrb.gmra.mxu1 %vm161_vm2, %v451_v20 }
 0xdac   :  { %764 = vmatpush.msrb.mxu1 %v1128_v2 }
 0xdae   :  { %765 = vmatpush.msrb.mxu1 %v1134_v3 }
 0xdb0   :  { %766 = vmatpush.msrb.mxu1 %v1144_v5 }
 0xdb2   :  { %767 = vmatpush.msrb.mxu1 %v1152_v6 }
 0xe28   :  { %v471_v23 = vpop.f32.mrf.mxu1 }
 0xe29   :  { %v474_v24 = vadd.f32 %v471_v23, %v128_v22  ;;  %v137_v23 = vadd.f32 %v1181_v12, %v1176_v10 }
 0xe2b   :  { %1023 = vtanh.f32 %v474_v24 }
 0xe31   :  { %v1024_v25 = vpop.eup %1023 }
 0xe32   :  { %480 = vrot.lane.b32.xlu0 %v1024_v25, %s1090_s5  ;;  %v476_v26 = vmul.f32 0.5, %v1024_v25 }
 0xe34   :  { %v477_v27 = vadd.f32 0.5, %v476_v26 }
 0xe36   :  { %v478_v30 = vmul.f32 %v477_v27, %v442_v14 }
 0xea4   :  { %v481_v28 = vpop.permute.xlu0 %480 }
 0xea5   :  { %v483_v29 = vmul.f32 %v481_v28, %v477_v27 }
 0xea7   :  { %485 = vrot.lane.b32.xlu1 %v483_v29, %s1091_s6 }
 0xf19   :  { %v486_v35 = vpop.permute.xlu1 %485 }
 0xf1a   :  { %v488_v37 = vadd.f32 %v486_v35, %v478_v30 }
 0xf1c   :  { %1025 = vtanh.f32 %v488_v37 }
 0xf22   :  { %v1026_v38 = vpop.eup %1025 }
 0xf23   :  { %491 = vrot.lane.b32.xlu2 %v1026_v38, %s1090_s5  ;;  %v140_v38 = vadd.f32 %v1181_v12, %v1216_v32 }
 0xf7d   :  { %v492_v39 = vpop.permute.xlu2 %491 }
 0xf7e   :  { %v1333_v40 = vmul.f32 %v492_v39, %v477_v27 }
 0xf80   :  { %496 = vrot.lane.b32.xlu0 %v1333_v40, %s1091_s6 }
 0xff2   :  { %v497_v42 = vpop.permute.xlu0 %496 }
 0xff3   :  { %981 = vmatmul.msk.f32.vlgmr.msrb.gmra.mxu2 %vm161_vm2, %v497_v42 }
 0xff4   :  { %810 = vmatpush.msrb.mxu2 %v1128_v2 }
 0xff6   :  { %811 = vmatpush.msrb.mxu2 %v1134_v3 }
 0xff8   :  { %812 = vmatpush.msrb.mxu2 %v1144_v5 }
 0xffa   :  { %813 = vmatpush.msrb.mxu2 %v1152_v6 }
0x1076   :  { %v517_v45 = vpop.f32.mrf.mxu2 }
0x1077   :  { %v520_v46 = vadd.f32 %v517_v45, %v131_v44 }
0x1079   :  { %1027 = vtanh.f32 %v520_v46 }
0x107f   :  { %v1028_v47 = vpop.eup %1027 }
0x1080   :  { %526 = vrot.lane.b32.xlu1 %v1028_v47, %s1090_s5  ;;  %v522_v48 = vmul.f32 0.5, %v1028_v47 }
0x1082   :  { %v523_v49 = vadd.f32 0.5, %v522_v48 }
0x1084   :  { %v524_v53 = vmul.f32 %v523_v49, %v488_v37 }
0x10f2   :  { %v527_v50 = vpop.permute.xlu1 %526 }
0x10f3   :  { %v529_v51 = vmul.f32 %v527_v50, %v523_v49 }
0x10f5   :  { %531 = vrot.lane.b32.xlu2 %v529_v51, %s1091_s6 }
0x114f   :  { %v532_v54 = vpop.permute.xlu2 %531 }
0x1150   :  { %v534_v58 = vadd.f32 %v532_v54, %v524_v53  ;;  %v143_v54 = vadd.f32 %v1181_v12, %v1218_v33 }
0x1152   :  { %1029 = vtanh.f32 %v534_v58 }
0x1158   :  { %v1030_v60 = vpop.eup %1029 }
0x1159   :  { %537 = vrot.lane.b32.xlu0 %v1030_v60, %s1090_s5 }
0x11cb   :  { %v538_v61 = vpop.permute.xlu0 %537 }
0x11cc   :  { %v1350_v62 = vmul.f32 %v538_v61, %v523_v49 }
0x11ce   :  { %553 = vrot.lane.b32.xlu1 %v1350_v62, %s1091_s6 }
0x1240   :  { %v554_v63 = vpop.permute.xlu1 %553 }
0x1241   :  { %982 = vmatmul.msk.f32.vlgmr.msrb.gmra.mxu3 %vm161_vm2, %v554_v63 }
0x1242   :  { %856 = vmatpush.msrb.mxu3 %v1128_v2 }
0x1244   :  { %857 = vmatpush.msrb.mxu3 %v1134_v3 }
0x1246   :  { %858 = vmatpush.msrb.mxu3 %v1144_v5 }
0x1248   :  { %859 = vmatpush.msrb.mxu3 %v1152_v6 }
0x12c4   :  { %v574_v1 = vpop.f32.mrf.mxu3 }
0x12c5   :  { %v577_v4 = vadd.f32 %v574_v1, %v134_v0 }
0x12c7   :  { %1031 = vtanh.f32 %v577_v4 }
0x12cd   :  { %v1032_v7 = vpop.eup %1031 }
0x12ce   :  { %583 = vrot.lane.b32.xlu2 %v1032_v7, %s1090_s5  ;;  %v579_v8 = vmul.f32 0.5, %v1032_v7 }
0x12d0   :  { %v580_v11 = vadd.f32 0.5, %v579_v8 }
0x12d2   :  { %v581_v15 = vmul.f32 %v580_v11, %v534_v58 }
0x1328   :  { %v584_v13 = vpop.permute.xlu2 %583 }
0x1329   :  { %v586_v14 = vmul.f32 %v584_v13, %v580_v11 }
0x132b   :  { %588 = vrot.lane.b32.xlu0 %v586_v14, %s1091_s6 }
0x139d   :  { %v589_v17 = vpop.permute.xlu0 %588 }
0x139e   :  { %v591_v18 = vadd.f32 %v589_v17, %v581_v15  ;;  %v146_v17 = vadd.f32 %v1181_v12, %v1220_v34 }
0x13a0   :  { %1033 = vtanh.f32 %v591_v18 }
0x13a6   :  { %v1034_v20 = vpop.eup %1033 }
0x13a7   :  { %594 = vrot.lane.b32.xlu1 %v1034_v20, %s1090_s5 }
0x1419   :  { %v595_v9 = vpop.permute.xlu1 %594 }
0x141a   :  { %v597_v21 = vmul.f32 %v595_v9, %v580_v11 }
0x141c   :  { %599 = vrot.lane.b32.xlu2 %v597_v21, %s1091_s6 }
0x1476   :  { %v1365_v22 = vpop.permute.xlu2 %599 }
0x1477   :  { %983 = vmatmul.msk.f32.vlgmr.msra.gmra.mxu1 %vm161_vm2, %v1365_v22 }
0x1478   :  { %902 = vmatpush.msra.mxu1 %v1128_v2 }
0x147a   :  { %903 = vmatpush.msra.mxu1 %v1134_v3 }
0x147c   :  { %904 = vmatpush.msra.mxu1 %v1144_v5 }
0x147e   :  { %905 = vmatpush.msra.mxu1 %v1152_v6 }
0x14f4   :  { %v620_v24 = vpop.f32.mrf.mxu1 }
0x14f5   :  { %v623_v25 = vadd.f32 %v620_v24, %v137_v23 }
0x14f7   :  { %1035 = vtanh.f32 %v623_v25 }
0x14fd   :  { %v1036_v26 = vpop.eup %1035 }
0x14fe   :  { %629 = vrot.lane.b32.xlu0 %v1036_v26, %s1090_s5  ;;  %v625_v27 = vmul.f32 0.5, %v1036_v26 }
0x1500   :  { %v626_v28 = vadd.f32 0.5, %v625_v27 }
0x1502   :  { %v627_v2 = vmul.f32 %v626_v28, %v591_v18 }
0x1570   :  { %v630_v29 = vpop.permute.xlu0 %629 }
0x1571   :  { %v632_v30 = vmul.f32 %v630_v29, %v626_v28 }
0x1573   :  { %634 = vrot.lane.b32.xlu1 %v632_v30, %s1091_s6 }
0x15e5   :  { %v635_v3 = vpop.permute.xlu1 %634 }
0x15e6   :  { %v637_v5 = vadd.f32 %v635_v3, %v627_v2  ;;  %v149_v3 = vadd.f32 %v1181_v12, %v1255_v55 }
0x15e8   :  { %1037 = vtanh.f32 %v637_v5 }
0x15ee   :  { %v1038_v6 = vpop.eup %1037 }
0x15ef   :  { %640 = vrot.lane.b32.xlu2 %v1038_v6, %s1090_s5 }
0x1649   :  { %v641_v10 = vpop.permute.xlu2 %640 }
0x164a   :  { %v1378_v35 = vmul.f32 %v641_v10, %v626_v28 }
0x164c   :  { %645 = vrot.lane.b32.xlu0 %v1378_v35, %s1091_s6 }
0x16be   :  { %v646_v37 = vpop.permute.xlu0 %645 }
0x16bf   :  { %984 = vmatmul.msk.f32.vlgmr.msra.gmra.mxu2 %vm161_vm2, %v646_v37 }
0x1742   :  { %v666_v39 = vpop.f32.mrf.mxu2 }
0x1743   :  { %v669_v41 = vadd.f32 %v666_v39, %v140_v38 }
0x1745   :  { %1039 = vtanh.f32 %v669_v41 }
0x174b   :  { %v1040_v42 = vpop.eup %1039 }
0x174c   :  { %675 = vrot.lane.b32.xlu1 %v1040_v42, %s1090_s5  ;;  %v671_v43 = vmul.f32 0.5, %v1040_v42 }
0x174e   :  { %v672_v44 = vadd.f32 0.5, %v671_v43 }
0x1750   :  { %v673_v47 = vmul.f32 %v672_v44, %v637_v5 }
0x17be   :  { %v676_v45 = vpop.permute.xlu1 %675 }
0x17bf   :  { %v678_v46 = vmul.f32 %v676_v45, %v672_v44 }
0x17c1   :  { %680 = vrot.lane.b32.xlu2 %v678_v46, %s1091_s6 }
0x181b   :  { %v681_v48 = vpop.permute.xlu2 %680 }
0x181c   :  { %v683_v49 = vadd.f32 %v681_v48, %v673_v47  ;;  %v152_v48 = vadd.f32 %v1181_v12, %v1257_v56 }
0x181e   :  { %1041 = vtanh.f32 %v683_v49 }
0x1824   :  { %v1042_v50 = vpop.eup %1041 }
0x1825   :  { %686 = vrot.lane.b32.xlu0 %v1042_v50, %s1090_s5 }
0x1897   :  { %v687_v32 = vpop.permute.xlu0 %686 }
0x1898   :  { %v1388_v51 = vmul.f32 %v687_v32, %v672_v44 }
0x189a   :  { %691 = vrot.lane.b32.xlu1 %v1388_v51, %s1091_s6 }
0x190c   :  { %v692_v53 = vpop.permute.xlu1 %691 }
0x190d   :  { %985 = vmatmul.msk.f32.vlgmr.msra.gmra.mxu3 %vm161_vm2, %v692_v53 }
0x1990   :  { %v712_v58 = vpop.f32.mrf.mxu3 }
0x1991   :  { %v715_v60 = vadd.f32 %v712_v58, %v143_v54 }
0x1993   :  { %1043 = vtanh.f32 %v715_v60 }
0x1999   :  { %v1044_v61 = vpop.eup %1043 }
0x199a   :  { %721 = vrot.lane.b32.xlu2 %v1044_v61, %s1090_s5  ;;  %v717_v63 = vmul.f32 0.5, %v1044_v61 }
0x199c   :  { %v718_v0 = vadd.f32 0.5, %v717_v63 }
0x199e   :  { %v719_v7 = vmul.f32 %v718_v0, %v683_v49 }
0x19f4   :  { %v722_v1 = vpop.permute.xlu2 %721 }
0x19f5   :  { %v724_v4 = vmul.f32 %v722_v1, %v718_v0 }
0x19f7   :  { %726 = vrot.lane.b32.xlu0 %v724_v4, %s1091_s6 }
0x1a69   :  { %v727_v8 = vpop.permute.xlu0 %726 }
0x1a6a   :  { %v729_v11 = vadd.f32 %v727_v8, %v719_v7  ;;  %v155_v8 = vadd.f32 %v1181_v12, %v1259_v57 }
0x1a6c   :  { %1045 = vtanh.f32 %v729_v11 }
0x1a72   :  { %v1046_v13 = vpop.eup %1045 }
0x1a73   :  { %732 = vrot.lane.b32.xlu1 %v1046_v13, %s1090_s5 }
0x1ae5   :  { %v733_v33 = vpop.permute.xlu1 %732 }
0x1ae6   :  { %v1398_v14 = vmul.f32 %v733_v33, %v718_v0 }
0x1ae8   :  { %748 = vrot.lane.b32.xlu2 %v1398_v14, %s1091_s6 }
0x1b42   :  { %v749_v15 = vpop.permute.xlu2 %748 }
0x1b43   :  { %986 = vmatmul.msk.f32.vlgmr.msrb.gmra.mxu1 %vm161_vm2, %v749_v15 }
0x1bc0   :  { %v769_v18 = vpop.f32.mrf.mxu1 }
0x1bc1   :  { %v772_v20 = vadd.f32 %v769_v18, %v146_v17 }
0x1bc3   :  { %1047 = vtanh.f32 %v772_v20 }
0x1bc9   :  { %v1048_v9 = vpop.eup %1047 }
0x1bca   :  { %778 = vrot.lane.b32.xlu0 %v1048_v9, %s1090_s5  ;;  %v774_v21 = vmul.f32 0.5, %v1048_v9 }
0x1bcc   :  { %v775_v23 = vadd.f32 0.5, %v774_v21 }
0x1bce   :  { %v776_v26 = vmul.f32 %v775_v23, %v729_v11 }
0x1c3c   :  { %v779_v24 = vpop.permute.xlu0 %778 }
0x1c3d   :  { %v781_v25 = vmul.f32 %v779_v24, %v775_v23 }
0x1c3f   :  { %783 = vrot.lane.b32.xlu1 %v781_v25, %s1091_s6 }
0x1cb1   :  { %v784_v27 = vpop.permute.xlu1 %783 }
0x1cb2   :  { %v786_v28 = vadd.f32 %v784_v27, %v776_v26 }
0x1cb4   :  { %1049 = vtanh.f32 %v786_v28 }
0x1cba   :  { %v1050_v29 = vpop.eup %1049 }
0x1cbb   :  { %789 = vrot.lane.b32.xlu2 %v1050_v29, %s1090_s5 }
0x1d15   :  { %v790_v34 = vpop.permute.xlu2 %789 }
0x1d16   :  { %v792_v30 = vmul.f32 %v790_v34, %v775_v23 }
0x1d18   :  { %794 = vrot.lane.b32.xlu0 %v792_v30, %s1091_s6 }
0x1d8a   :  { %v1409_v2 = vpop.permute.xlu0 %794 }
0x1d8b   :  { %987 = vmatmul.msk.f32.vlgmr.msrb.gmra.mxu2 %vm161_vm2, %v1409_v2 }
0x1e0e   :  { %v815_v5 = vpop.f32.mrf.mxu2 }
0x1e0f   :  { %v818_v6 = vadd.f32 %v815_v5, %v149_v3 }
0x1e11   :  { %1051 = vtanh.f32 %v818_v6 }
0x1e17   :  { %v1052_v10 = vpop.eup %1051 }
0x1e18   :  { %824 = vrot.lane.b32.xlu1 %v1052_v10, %s1090_s5  ;;  %v820_v37 = vmul.f32 0.5, %v1052_v10 }
0x1e1a   :  { %v821_v38 = vadd.f32 0.5, %v820_v37 }
0x1e1c   :  { %v822_v42 = vmul.f32 %v821_v38, %v786_v28 }
0x1e8a   :  { %v825_v39 = vpop.permute.xlu1 %824 }
0x1e8b   :  { %v827_v41 = vmul.f32 %v825_v39, %v821_v38 }
0x1e8d   :  { %829 = vrot.lane.b32.xlu2 %v827_v41, %s1091_s6 }
0x1ee7   :  { %v830_v43 = vpop.permute.xlu2 %829 }
0x1ee8   :  { %v832_v44 = vadd.f32 %v830_v43, %v822_v42 }
0x1eea   :  { %1053 = vtanh.f32 %v832_v44 }
0x1ef0   :  { %v1054_v45 = vpop.eup %1053 }
0x1ef1   :  { %835 = vrot.lane.b32.xlu0 %v1054_v45, %s1090_s5 }
0x1f63   :  { %v836_v55 = vpop.permute.xlu0 %835 }
0x1f64   :  { %v838_v46 = vmul.f32 %v836_v55, %v821_v38 }
0x1f66   :  { %840 = vrot.lane.b32.xlu1 %v838_v46, %s1091_s6 }
0x1fd8   :  { %v841_v47 = vpop.permute.xlu1 %840 }
0x1fd9   :  { %988 = vmatmul.msk.f32.vlgmr.msrb.gmra.mxu3 %vm161_vm2, %v841_v47 }
0x205c   :  { %v861_v49 = vpop.f32.mrf.mxu3 }
0x205d   :  { %v864_v50 = vadd.f32 %v861_v49, %v152_v48 }
0x205f   :  { %1055 = vtanh.f32 %v864_v50 }
0x2065   :  { %v1056_v32 = vpop.eup %1055 }
0x2066   :  { %870 = vrot.lane.b32.xlu2 %v1056_v32, %s1090_s5  ;;  %v866_v53 = vmul.f32 0.5, %v1056_v32 }
0x2068   :  { %v867_v54 = vadd.f32 0.5, %v866_v53 }
0x206a   :  { %v868_v61 = vmul.f32 %v867_v54, %v832_v44 }
0x20c0   :  { %v871_v58 = vpop.permute.xlu2 %870 }
0x20c1   :  { %v873_v60 = vmul.f32 %v871_v58, %v867_v54 }
0x20c3   :  { %875 = vrot.lane.b32.xlu0 %v873_v60, %s1091_s6 }
0x2135   :  { %v876_v63 = vpop.permute.xlu0 %875 }
0x2136   :  { %v878_v0 = vadd.f32 %v876_v63, %v868_v61 }
0x2138   :  { %1057 = vtanh.f32 %v878_v0 }
0x213e   :  { %v1058_v1 = vpop.eup %1057 }
0x213f   :  { %881 = vrot.lane.b32.xlu1 %v1058_v1, %s1090_s5 }
0x21b1   :  { %v882_v56 = vpop.permute.xlu1 %881 }
0x21b2   :  { %v884_v4 = vmul.f32 %v882_v56, %v867_v54 }
0x21b4   :  { %886 = vrot.lane.b32.xlu2 %v884_v4, %s1091_s6 }
0x21bc   :  { %345 = vrot.lane.b32.xlu2 %v1242_v52, %s1090_s5 }
0x220e   :  { %v887_v7 = vpop.permute.xlu2 %886 }
0x220f   :  { %989 = vmatmul.msk.f32.vlgmr.msra.gmra.mxu1 %vm161_vm2, %v887_v7 }
0x2216   :  { %v346_v25 = vpop.permute.xlu2 %345 }
0x2217   :  { %v351_v26 = vsel %vm161_vm2, %v1208_v31, %v346_v25 }
0x228c   :  { %v907_v11 = vpop.f32.mrf.mxu1 }
0x228d   :  { %v910_v13 = vadd.f32 %v907_v11, %v155_v8 }
0x228f   :  { %1059 = vtanh.f32 %v910_v13 }
0x2295   :  { %v1060_v33 = vpop.eup %1059 }
0x2296   :  { %916 = vrot.lane.b32.xlu0 %v1060_v33, %s1090_s5  ;;  %v912_v52 = vmul.f32 0.5, %v1060_v33 }
0x2298   :  { %v913_v15 = vadd.f32 0.5, %v912_v52 }
0x229e   :  { %542 = vrot.lane.b32.xlu0 %v1320_v19, %s1090_s5  ;;  %v914_v19 = vmul.f32 %v913_v15, %v878_v0 }
0x22a6   :  { %932 = vrot.lane.b32.xlu0 %v838_v46, %s1090_s5 }
0x22ae   :  { %740 = vrot.lane.b32.xlu0 %v1388_v51, %s1092_s0 }
0x2308   :  { %v917_v17 = vpop.permute.xlu0 %916 }
0x2309   :  { %v919_v18 = vmul.f32 %v917_v17, %v913_v15 }
0x230b   :  { %921 = vrot.lane.b32.xlu1 %v919_v18, %s1091_s6 }
0x2310   :  { %v543_v12 = vpop.permute.xlu0 %542 }
0x2313   :  { %737 = vrot.lane.b32.xlu1 %v1378_v35, %s1090_s5 }
0x2318   :  { %v933_v57 = vpop.permute.xlu0 %932 }
0x231b   :  { %348 = vrot.lane.b32.xlu1 %v1269_v16, %s1092_s0 }
0x2320   :  { %v741_v23 = vpop.permute.xlu0 %740 }
0x2323   :  { %935 = vrot.lane.b32.xlu1 %v884_v4, %s1092_s0 }
0x237d   :  { %v922_v20 = vpop.permute.xlu1 %921 }
0x237e   :  { %v924_v9 = vadd.f32 %v922_v20, %v914_v19 }
0x2380   :  { %1061 = vtanh.f32 %v924_v9 }
0x2385   :  { %v738_v51 = vpop.permute.xlu1 %737 }
0x2386   :  { %v1062_v21 = vpop.eup %1061  ;;  %v743_v24 = vsel %vm161_vm2, %v1365_v22, %v738_v51 }
0x2387   :  { %v744_v35 = vsel %vm352_vm3, %v743_v24, %v741_v23  ;;  %927 = vrot.lane.b32.xlu2 %v1062_v21, %s1090_s5  ;;  %s947_s5 = sshll.u32 %s1093_s30, 4  ;;  %s948_s5 = int_to_ptr.vmem [resolvable:$true] %s947_s5 }
0x2388   :  { %v745_v16 = vsel %vm354_vm4, %v744_v35, %v1398_v14  ;;  %v938_v14 = vsel %vm161_vm2, %v1409_v2, %v933_v57 }
0x2389   :  { %746 = vst [vmem:[#allocation2 + $0x10] sm:$0xff] %v745_v16 }
0x238d   :  { %v349_v27 = vpop.permute.xlu1 %348 }
0x238e   :  { %v353_v28 = vsel %vm352_vm3, %v351_v26, %v349_v27 }
0x238f   :  { %v355_v29 = vsel %vm354_vm4, %v353_v28, %v1282_v36  ;;  %545 = vrot.lane.b32.xlu2 %v1333_v40, %s1092_s0  ;;  %v548_v36 = vsel %vm161_vm2, %v1304_v59, %v543_v12 }
0x2390   :  { %356 = vst [vmem:[#allocation2] sm:$0xff] %v355_v29 }
0x2395   :  { %v936_v22 = vpop.permute.xlu1 %935 }
0x2396   :  { %v939_v3 = vsel %vm352_vm3, %v938_v14, %v936_v22 }
0x23e1   :  { %v928_v34 = vpop.permute.xlu2 %927 }
0x23e2   :  { %v930_v30 = vmul.f32 %v928_v34, %v913_v15 }
0x23e4   :  { %v940_v31 = vsel %vm354_vm4, %v939_v3, %v930_v30 }
0x23e5   :  { %941 = vst [vmem:[#allocation2 + $0x18] sm:$0xff] %v940_v31 }
0x23e9   :  { %v546_v40 = vpop.permute.xlu2 %545 }
0x23ea   :  { %v549_v5 = vsel %vm352_vm3, %v548_v36, %v546_v40 }
0x23eb   :  { %v550_v2 = vsel %vm354_vm4, %v549_v5, %v1350_v62 }
0x23ec   :  { %551 = vst [vmem:[#allocation2 + $0x8] sm:$0xff] %v550_v2 }
0x23ed   :  { %952 = dma.vmem_to_hbm [thread:$0]  %s948_s5, 512, %s950_s7, [#allocation3]  }
0x23ee   :  { %1087 = dma.done.wait [#allocation3], 512  }
0x23ef   :  { %1088 = vsyncadd [#allocation3], 4294966784 }
0x23f0   :  { %957 = vsyncpa [#allocation3], 1 }

</bundles_post_ra>
